<compile_context>
chip_gen: v6e
topology: v6e:2x2x1
jax: 0.10.0
libtpu: 0.0.40
codegen_flags: <defaults>
</compile_context>

<pallas_src>
import jax
import jax.numpy as jnp
from jax.experimental import pallas as pl
from jax.experimental.pallas import tpu as pltpu


def critic_kernel(x_ref, w1_ref, b1_ref, w2_ref, b2_ref, w3_ref, b3_ref, o_ref):
    # In-kernel bf16 cast of the observation tile (f32 at the call boundary).
    x = x_ref[...].astype(jnp.bfloat16)

    # Layer 1: (TM, obs)bf16 @ (obs, 1024)bf16 -> f32 acc, bias + ReLU in f32.
    h1 = jnp.dot(x, w1_ref[...], preferred_element_type=jnp.float32)
    h1 = jnp.maximum(h1 + b1_ref[...], 0.0)

    # Layer 2: (TM, 1024)bf16 @ (1024, 1024)bf16 -> f32 acc, bias + ReLU in f32.
    h2 = jnp.dot(h1.astype(jnp.bfloat16), w2_ref[...],
                 preferred_element_type=jnp.float32)
    h2 = jnp.maximum(h2 + b2_ref[...], 0.0)

    # Layer 3: 1024 -> 1 as VPU multiply + cross-lane reduce (w3 stored (1, 1024) f32).
    q = jnp.sum(h2 * w3_ref[...], axis=-1, keepdims=True)
    o_ref[...] = q + b3_ref[0, 0]          # b3 scalar read from SMEM


def critic_forward(state, kernel_params, *, tm=256):
    """state: (B, obs) float32.  kernel_params: output of prepare_params().
    Returns (B, 1) float32."""
    w1_bf, b1, w2_bf, b2, w3, b3 = kernel_params
    batch, obs = state.shape
    h1_dim = w1_bf.shape[1]
    h2_dim = w2_bf.shape[1]

    # Batch tile: multiple of 16 (sublane-friendly for both f32 and bf16 views).
    if batch >= tm:
        tm_eff = tm
    else:
        tm_eff = max(16, ((batch + 15) // 16) * 16)
    pad_b = (-batch) % tm_eff
    if pad_b:
        state = jnp.pad(state, ((0, pad_b), (0, 0)))
    bp = state.shape[0]
    grid = (bp // tm_eff,)

    out = pl.pallas_call(
        critic_kernel,
        out_shape=jax.ShapeDtypeStruct((bp, 1), jnp.float32),
        grid=grid,
        in_specs=[
            pl.BlockSpec((tm_eff, obs), lambda i: (i, 0)),      # x tile walks batch (f32)
            pl.BlockSpec((obs, h1_dim), lambda i: (0, 0)),      # w1 resident (bf16)
            pl.BlockSpec((1, h1_dim), lambda i: (0, 0)),        # b1 resident (f32)
            pl.BlockSpec((h1_dim, h2_dim), lambda i: (0, 0)),   # w2 resident (bf16)
            pl.BlockSpec((1, h2_dim), lambda i: (0, 0)),        # b2 resident (f32)
            pl.BlockSpec((1, h2_dim), lambda i: (0, 0)),        # w3 resident (1, 1024) f32
            pl.BlockSpec(memory_space=pltpu.MemorySpace.SMEM),  # b3 scalar in SMEM
        ],
        out_specs=pl.BlockSpec((tm_eff, 1), lambda i: (i, 0)),
        compiler_params=pltpu.CompilerParams(
            dimension_semantics=("parallel",),
            vmem_limit_bytes=32 * 1024 * 1024),
    )(state, w1_bf, b1, w2_bf, b2, w3, b3)

    return out[:batch]


def init_params(key, observation_size, hidden=(1024, 1024)):
    """f32 master params, PyTorch nn.Linear default init (U[-1/sqrt(in), 1/sqrt(in)]).
    Weights stored as (in, out); w3 stored as (1, hidden) for the reduce path."""
    k = jax.random.split(key, 6)
    h1, h2 = hidden

    def uni(kk, shape, fan_in):
        bound = 1.0 / jnp.sqrt(fan_in)
        return jax.random.uniform(kk, shape, jnp.float32, -bound, bound)

    w1 = uni(k[0], (observation_size, h1), observation_size)
    b1 = uni(k[1], (1, h1), observation_size)
    w2 = uni(k[2], (h1, h2), h1)
    b2 = uni(k[3], (1, h2), h1)
    w3 = uni(k[4], (1, h2), h2)   # stored (1, 1024); logically the (1024, 1) layer
    b3 = uni(k[5], (1, 1), h2)
    return (w1, b1, w2, b2, w3, b3)


def prepare_params(params_f32):
    """Cache kernel-ready params ONCE (bf16 big-matmul weights, f32 biases/w3).
    Call this only when the f32 master params change, never per forward."""
    w1, b1, w2, b2, w3, b3 = params_f32
    return (w1.astype(jnp.bfloat16), b1,
            w2.astype(jnp.bfloat16), b2,
            w3, b3)


def critic_reference_f32(state, params_f32):
    """Full-precision plain-JAX reference."""
    w1, b1, w2, b2, w3, b3 = params_f32
    h1 = jnp.maximum(state @ w1 + b1, 0.0)
    h2 = jnp.maximum(h1 @ w2 + b2, 0.0)
    return h2 @ w3.T + b3


def critic_reference_bf16(state, params_f32):
    """Reference matching the kernel's precision (bf16 matmuls, f32 accumulate)."""
    w1, b1, w2, b2, w3, b3 = params_f32
    xb = state.astype(jnp.bfloat16)
    h1 = jnp.dot(xb, w1.astype(jnp.bfloat16), preferred_element_type=jnp.float32)
    h1 = jnp.maximum(h1 + b1, 0.0)
    h2 = jnp.dot(h1.astype(jnp.bfloat16), w2.astype(jnp.bfloat16),
                 preferred_element_type=jnp.float32)
    h2 = jnp.maximum(h2 + b2, 0.0)
    return jnp.sum(h2 * w3, axis=-1, keepdims=True) + b3


if __name__ == "__main__":
    key = jax.random.PRNGKey(0)
    k_params, k_state, k_state2 = jax.random.split(key, 3)

    observation_size = 16
    batch = 2

    params_f32 = init_params(k_params, observation_size)
    kernel_params = prepare_params(params_f32)          # bf16 weight cast happens ONCE here
    kernel_params = jax.block_until_ready(kernel_params)

    state = jax.random.normal(k_state, (batch, observation_size), jnp.float32)

    out = critic_forward(state, kernel_params)
    out = jax.block_until_ready(out)

    ref_bf16 = critic_reference_bf16(state, params_f32)
    ref_f32 = critic_reference_f32(state, params_f32)
    assert out.shape == (batch, 1), out.shape
    assert jnp.allclose(out, ref_bf16, atol=1e-2, rtol=1e-2), (out, ref_bf16)
    assert jnp.allclose(out, ref_f32, atol=5e-2, rtol=5e-2), (out, ref_f32)

    # Exercise the multi-tile grid path (batch not a multiple of the tile).
    batch2 = 40
    state2 = jax.random.normal(k_state2, (batch2, observation_size), jnp.float32)
    out2 = jax.block_until_ready(critic_forward(state2, kernel_params, tm=16))
    ref2 = critic_reference_bf16(state2, params_f32)
    assert out2.shape == (batch2, 1), out2.shape
    assert jnp.allclose(out2, ref2, atol=1e-2, rtol=1e-2), (out2, ref2)

    print("KERNEL_OK")
</pallas_src>

<mosaic_0001>
module attributes {stable_mosaic.version = 11 : i64} {
  func.func @critic_kernel(%arg0: i32, %arg1: memref<16x16xf32, #tpu.memory_space<vmem>>, %arg2: memref<16x1024xbf16, #tpu.memory_space<vmem>>, %arg3: memref<1x1024xf32, #tpu.memory_space<vmem>>, %arg4: memref<1024x1024xbf16, #tpu.memory_space<vmem>>, %arg5: memref<1x1024xf32, #tpu.memory_space<vmem>>, %arg6: memref<1x1024xf32, #tpu.memory_space<vmem>>, %arg7: memref<1x1xf32, #tpu.memory_space<smem>>, %arg8: memref<16x1xf32, #tpu.memory_space<vmem>>) attributes {dimension_semantics = [#tpu.dimension_semantics<parallel>], iteration_bounds = array<i64: 1>, scalar_prefetch = 0 : i64, scratch_operands = 0 : i64, tpu.core_type = #tpu.core_type<tc>, window_params = [{transform_indices = @transform_0, window_bounds = array<i64: 16, 16>}, {pipeline_mode = #tpu.pipeline_mode<synchronous>, transform_indices = @transform_1, window_bounds = array<i64: 16, 1024>}, {pipeline_mode = #tpu.pipeline_mode<synchronous>, transform_indices = @transform_2, window_bounds = array<i64: 1, 1024>}, {pipeline_mode = #tpu.pipeline_mode<synchronous>, transform_indices = @transform_3, window_bounds = array<i64: 1024, 1024>}, {pipeline_mode = #tpu.pipeline_mode<synchronous>, transform_indices = @transform_4, window_bounds = array<i64: 1, 1024>}, {pipeline_mode = #tpu.pipeline_mode<synchronous>, transform_indices = @transform_5, window_bounds = array<i64: 1, 1024>}, {transform_indices = @transform_6, window_bounds = array<i64: 1, 1>}, {transform_indices = @transform_7, window_bounds = array<i64: 16, 1>}]} {
    %c0 = arith.constant 0 : index
    %c0_0 = arith.constant 0 : index
    %0 = vector.load %arg1[%c0, %c0_0] : memref<16x16xf32, #tpu.memory_space<vmem>>, vector<16x16xf32>
    %1 = arith.truncf %0 : vector<16x16xf32> to vector<16x16xbf16>
    %c0_1 = arith.constant 0 : index
    %c0_2 = arith.constant 0 : index
    %2 = vector.load %arg2[%c0_1, %c0_2] : memref<16x1024xbf16, #tpu.memory_space<vmem>>, vector<16x1024xbf16>
    %cst = arith.constant dense<0.000000e+00> : vector<16x1024xf32>
    %3 = tpu.matmul %1, %2, %cst {dimension_numbers = #tpu.dot_dimension_numbers<[1], [0], [0], [1], [0, 0, 1, 1], [], []>} : vector<16x16xbf16>, vector<16x1024xbf16>, vector<16x1024xf32> -> vector<16x1024xf32>
    %c0_3 = arith.constant 0 : index
    %c0_4 = arith.constant 0 : index
    %4 = vector.load %arg3[%c0_3, %c0_4] : memref<1x1024xf32, #tpu.memory_space<vmem>>, vector<1x1024xf32>
    %5 = vector.broadcast %4 : vector<1x1024xf32> to vector<16x1024xf32>
    %6 = arith.addf %3, %5 : vector<16x1024xf32>
    %cst_5 = arith.constant 0.000000e+00 : f32
    %7 = vector.broadcast %cst_5 : f32 to vector<16x1024xf32>
    %8 = arith.maximumf %6, %7 : vector<16x1024xf32>
    %9 = arith.truncf %8 : vector<16x1024xf32> to vector<16x1024xbf16>
    %c0_6 = arith.constant 0 : index
    %c0_7 = arith.constant 0 : index
    %10 = vector.load %arg4[%c0_6, %c0_7] : memref<1024x1024xbf16, #tpu.memory_space<vmem>>, vector<1024x1024xbf16>
    %cst_8 = arith.constant dense<0.000000e+00> : vector<16x1024xf32>
    %11 = tpu.matmul %9, %10, %cst_8 {dimension_numbers = #tpu.dot_dimension_numbers<[1], [0], [0], [1], [0, 0, 1, 1], [], []>} : vector<16x1024xbf16>, vector<1024x1024xbf16>, vector<16x1024xf32> -> vector<16x1024xf32>
    %c0_9 = arith.constant 0 : index
    %c0_10 = arith.constant 0 : index
    %12 = vector.load %arg5[%c0_9, %c0_10] : memref<1x1024xf32, #tpu.memory_space<vmem>>, vector<1x1024xf32>
    %13 = vector.broadcast %12 : vector<1x1024xf32> to vector<16x1024xf32>
    %14 = arith.addf %11, %13 : vector<16x1024xf32>
    %cst_11 = arith.constant 0.000000e+00 : f32
    %15 = vector.broadcast %cst_11 : f32 to vector<16x1024xf32>
    %16 = arith.maximumf %14, %15 : vector<16x1024xf32>
    %c0_12 = arith.constant 0 : index
    %c0_13 = arith.constant 0 : index
    %17 = vector.load %arg6[%c0_12, %c0_13] : memref<1x1024xf32, #tpu.memory_space<vmem>>, vector<1x1024xf32>
    %18 = vector.broadcast %17 : vector<1x1024xf32> to vector<16x1024xf32>
    %19 = arith.mulf %16, %18 : vector<16x1024xf32>
    %cst_14 = arith.constant dense<0.000000e+00> : vector<16xf32>
    %20 = vector.multi_reduction <add>, %19, %cst_14 [1] : vector<16x1024xf32> to vector<16xf32>
    %21 = vector.shape_cast %20 : vector<16xf32> to vector<16x1xf32>
    %c0_15 = arith.constant 0 : index
    %c0_16 = arith.constant 0 : index
    %22 = memref.load %arg7[%c0_15, %c0_16] : memref<1x1xf32, #tpu.memory_space<smem>>
    %23 = vector.broadcast %22 : f32 to vector<16x1xf32>
    %24 = arith.addf %21, %23 : vector<16x1xf32>
    %c0_17 = arith.constant 0 : index
    %c0_18 = arith.constant 0 : index
    %25 = vector.load %arg8[%c0_17, %c0_18] : memref<16x1xf32, #tpu.memory_space<vmem>>, vector<16x1xf32>
    tpu.vector_store %arg8[%c0_17, %c0_18], %24 {strides = array<i32>} : memref<16x1xf32, #tpu.memory_space<vmem>>, vector<16x1xf32>,
    return
  }
  func.func @transform_0(%arg0: i32) -> (i32, i32) {
    %c0_i32 = arith.constant 0 : i32
    %c0_i32_0 = arith.constant 0 : i32
    return %arg0, %c0_i32 : i32, i32
  }
  func.func @transform_1(%arg0: i32) -> (i32, i32) {
    %c0_i32 = arith.constant 0 : i32
    %c0_i32_0 = arith.constant 0 : i32
    %c0_i32_1 = arith.constant 0 : i32
    return %c0_i32, %c0_i32_0 : i32, i32
  }
  func.func @transform_2(%arg0: i32) -> (i32, i32) {
    %c0_i32 = arith.constant 0 : i32
    %c0_i32_0 = arith.constant 0 : i32
    %c0_i32_1 = arith.constant 0 : i32
    return %c0_i32, %c0_i32_0 : i32, i32
  }
  func.func @transform_3(%arg0: i32) -> (i32, i32) {
    %c0_i32 = arith.constant 0 : i32
    %c0_i32_0 = arith.constant 0 : i32
    %c0_i32_1 = arith.constant 0 : i32
    return %c0_i32, %c0_i32_0 : i32, i32
  }
  func.func @transform_4(%arg0: i32) -> (i32, i32) {
    %c0_i32 = arith.constant 0 : i32
    %c0_i32_0 = arith.constant 0 : i32
    %c0_i32_1 = arith.constant 0 : i32
    return %c0_i32, %c0_i32_0 : i32, i32
  }
  func.func @transform_5(%arg0: i32) -> (i32, i32) {
    %c0_i32 = arith.constant 0 : i32
    %c0_i32_0 = arith.constant 0 : i32
    %c0_i32_1 = arith.constant 0 : i32
    return %c0_i32, %c0_i32_0 : i32, i32
  }
  func.func @transform_6(%arg0: i32) -> (i32, i32) {
    %c0_i32 = arith.constant 0 : i32
    %c0_i32_0 = arith.constant 0 : i32
    %c0_i32_1 = arith.constant 0 : i32
    return %c0_i32, %c0_i32_0 : i32, i32
  }
  func.func @transform_7(%arg0: i32) -> (i32, i32) {
    %c0_i32 = arith.constant 0 : i32
    %c0_i32_0 = arith.constant 0 : i32
    return %arg0, %c0_i32 : i32, i32
  }
}

</mosaic_0001>

<bundles_post_ra>
// kernel: tpu_custom_call.1
= control target key start
LH: loop header
LB: loop body
LE: loop exit
PB: predicated region body
PF: predicated region fallthrough
CT: control target
= control target key end

     0   :  { %13 = vsyncpa [#allocation4], 0  ;;  %s5249_s0 = inlined_call_operand.hbm [shape: f32[16,16], index: 0, kind: input, shape index: {}]   ;;  %s5250_s1 = inlined_call_operand.hbm [shape: bf16[16,1024], index: 1, kind: input, shape index: {}]   ;;  %s5251_s2 = inlined_call_operand.hbm [shape: f32[1,1024], index: 2, kind: input, shape index: {}]   ;;  %s5252_s3 = inlined_call_operand.hbm [shape: bf16[1024,1024], index: 3, kind: input, shape index: {}]   ;;  %s5253_s4 = inlined_call_operand.hbm [shape: f32[1,1024], index: 4, kind: input, shape index: {}]   ;;  %s5254_s5 = inlined_call_operand.hbm [shape: f32[1,1024], index: 5, kind: input, shape index: {}]   ;;  %s5255_s6 = inlined_call_operand.<no memory space> [shape: f32[1,1], index: 6, kind: input, shape index: {}]   ;;  %s5256_s7 = inlined_call_operand.vmem [shape: f32[16,1], index: 7, kind: output, shape index: {}]  }
   0x1   :  { %14 = vsyncpa [#allocation6], 0 }
   0x2   :  { %15 = vsyncpa [#allocation9], 0 }
   0x3   :  { %16 = vsyncpa [#allocation12], 0  ;;  %s4969_s24 = smov [#allocation5]  }
   0x4   :  { %s34_s25 = sshll.u32 %s4969_s24, 4  ;;  %s35_s25 = int_to_ptr.vmem [resolvable:$true] %s34_s25 }
   0x5   :  { %s4849_s26 = scalar_lea.vmem %s35_s25, 1024  ;;  %p4854_p1 = scmp.lt.s32.totalorder %s35_s25, %s35_s25 }
   0x6   :  { %p4850_p0 = scmp.ne.s32.totalorder %s35_s25, %s4849_s26  ;;  %p4855_p2 = scmp.lt.s32.totalorder %s4849_s26, %s4849_s26 }
   0x8   :  { %p4856_p3 = por %p4855_p2, %p4854_p1 }
   0xa   :  { %p4857_p4 = pnand %p4856_p3, %p4850_p0 }
   0xc   :  { %4860 = shalt.err (!%p4857_p4)
}
   0xd   :  { %s4970_s27 = smov 512   ;;  %s4971_s28 = smov 32  }
   0xe   :  { %40 = dma.hbm_to_vmem [thread:$0]  %s5250_s1, 1024, %s35_s25, [#allocation6], %s4970_s27, %s4970_s27, %s4971_s28  }
   0xf   :  { %s4972_s8 = smov [#allocation8]   ;;  %s4973_s10 = smov [#allocation3]  }
  0x10   :  { %s56_s9 = sshll.u32 %s4972_s8, 4  ;;  %s22_s11 = sshll.u32 %s4973_s10, 4  ;;  %s57_s9 = int_to_ptr.vmem [resolvable:$true] %s56_s9  ;;  %s23_s11 = int_to_ptr.vmem [resolvable:$true] %s22_s11 }
  0x11   :  { %s4869_s12 = scalar_lea.vmem %s57_s9, 65536  ;;  %p4874_p6 = scmp.lt.s32.totalorder %s57_s9, %s57_s9 }
  0x12   :  { %p4870_p5 = scmp.ne.s32.totalorder %s57_s9, %s4869_s12  ;;  %p4875_p7 = scmp.lt.s32.totalorder %s4869_s12, %s4869_s12 }
  0x14   :  { %p4876_p8 = por %p4875_p7, %p4874_p6 }
  0x16   :  { %p4877_p9 = pnand %p4876_p8, %p4870_p5 }
  0x18   :  { %4880 = shalt.err (!%p4877_p9)
}
  0x19   :  { %62 = dma.hbm_to_vmem [thread:$0]  %s5252_s3, 65536, %s57_s9, [#allocation9], %s4970_s27, %s4970_s27, %s4971_s28  }
  0x1a   :  { %s4889_s15 = scalar_lea.vmem %s23_s11, 256  ;;  %p4894_p11 = scmp.lt.s32.totalorder %s23_s11, %s23_s11 }
  0x1b   :  { %p4890_p10 = scmp.ne.s32.totalorder %s23_s11, %s4889_s15  ;;  %p4895_p12 = scmp.lt.s32.totalorder %s4889_s15, %s4889_s15 }
  0x1d   :  { %p4896_p13 = por %p4895_p12, %p4894_p11 }
  0x1f   :  { %p4897_p0 = pnand %p4896_p13, %p4890_p10 }
  0x21   :  { %4900 = shalt.err (!%p4897_p0)
}
  0x22   :  { %s4974_s1 = smov 128   ;;  %s4975_s16 = smov 8  }
  0x23   :  { %28 = dma.hbm_to_vmem [thread:$0]  %s5249_s0, 256, %s23_s11, [#allocation4], %s4974_s1, %s4974_s1, %s4975_s16  }
  0x24   :  { %s4976_s19 = smov [#allocation7]   ;;  %s4977_s21 = smov [#allocation10]  }
  0x25   :  { %s47_s20 = sshll.u32 %s4976_s19, 4  ;;  %s69_s22 = sshll.u32 %s4977_s21, 4  ;;  %s48_s20 = int_to_ptr.vmem [resolvable:$true] %s47_s20  ;;  %s70_s22 = int_to_ptr.vmem [resolvable:$true] %s69_s22 }
  0x26   :  { %s4909_s3 = scalar_lea.vmem %s48_s20, 128  ;;  %p4914_p2 = scmp.lt.s32.totalorder %s48_s20, %s48_s20 }
  0x27   :  { %p4910_p1 = scmp.ne.s32.totalorder %s48_s20, %s4909_s3  ;;  %p4915_p3 = scmp.lt.s32.totalorder %s4909_s3, %s4909_s3 }
  0x29   :  { %p4916_p4 = por %p4915_p3, %p4914_p2 }
  0x2b   :  { %p4917_p5 = pnand %p4916_p4, %p4910_p1 }
  0x2d   :  { %4920 = shalt.err (!%p4917_p5)
}
  0x2e   :  { %50 = dma.hbm_to_vmem [thread:$0]  %s5251_s2, 128, %s48_s20, [#allocation6]  }
  0x2f   :  { %s4929_s25 = scalar_lea.vmem %s70_s22, 128  ;;  %p4934_p7 = scmp.lt.s32.totalorder %s70_s22, %s70_s22 }
  0x30   :  { %p4930_p6 = scmp.ne.s32.totalorder %s70_s22, %s4929_s25  ;;  %p4935_p8 = scmp.lt.s32.totalorder %s4929_s25, %s4929_s25 }
  0x32   :  { %p4936_p9 = por %p4935_p8, %p4934_p7 }
  0x34   :  { %p4937_p10 = pnand %p4936_p9, %p4930_p6 }
  0x36   :  { %4940 = shalt.err (!%p4937_p10)
}
  0x37   :  { %72 = dma.hbm_to_vmem [thread:$0]  %s5253_s4, 128, %s70_s22, [#allocation9]  }
  0x38   :  { %s4978_s27 = smov [#allocation11]  }
  0x39   :  { %s79_s28 = sshll.u32 %s4978_s27, 4  ;;  %s80_s28 = int_to_ptr.vmem [resolvable:$true] %s79_s28 }
  0x3a   :  { %s4949_s29 = scalar_lea.vmem %s80_s28, 128  ;;  %p4954_p12 = scmp.lt.s32.totalorder %s80_s28, %s80_s28 }
  0x3b   :  { %p4950_p11 = scmp.ne.s32.totalorder %s80_s28, %s4949_s29  ;;  %p4955_p13 = scmp.lt.s32.totalorder %s4949_s29, %s4949_s29 }
  0x3d   :  { %p4956_p0 = por %p4955_p13, %p4954_p12 }
  0x3f   :  { %p4957_p1 = pnand %p4956_p0, %p4950_p11 }
  0x41   :  { %4960 = shalt.err (!%p4957_p1)
}
  0x42   :  { %82 = dma.hbm_to_vmem [thread:$0]  %s5254_s5, 128, %s80_s28, [#allocation12]  }
  0x43   :  { %4961 = dma.done.wait [#allocation4], 256  }
  0x44   :  { %4962 = vsyncadd [#allocation4], 4294967040 }
  0x45   :  { %4963 = dma.done.wait [#allocation6], 1152  }
  0x46   :  { %4964 = vsyncadd [#allocation6], 4294966144 }
  0x47   :  { %4965 = dma.done.wait [#allocation9], 65664  }
  0x48   :  { %4966 = vsyncadd [#allocation9], 4294901632 }
  0x49   :  { %4967 = dma.done.wait [#allocation12], 128  }
  0x4a   :  { %4968 = vsyncadd [#allocation12], 4294967168  ;;  %v4979_v0 = vmov 0   ;;  %v107_v1 = vld [vmem:[#allocation5] sm:$0xff]  ;;  %v108_v3 = vld [vmem:[#allocation5 + $0x8] sm:$0xff]  ;;  %vm197_vm0 = vcmask 130048  }
  0x4b   :  { %233 = vmatprep.mubr.bf16.mxu0 %v4979_v0  ;;  %276 = vmatprep.mubr.bf16.mxu1 %v4979_v0  ;;  %v111_v2 = vld [vmem:[#allocation5 + $0x20] sm:$0xff]  ;;  %v112_v5 = vld [vmem:[#allocation5 + $0x28] sm:$0xff]  ;;  %v104_v7 = vld [vmem:[#allocation3] sm:$0xff]  ;;  %vm4295_vm1 = vcmask 7168  }
  0x4c   :  { %v4307_v4 = vcombine.high %v107_v1, %v111_v2  ;;  %v4306_v6 = vcombine.low %v107_v1, %v111_v2  ;;  %v105_v8 = vld [vmem:[#allocation3 + $0x8] sm:$0xff]  ;;  %v4309_v9 = vcombine.high %v108_v3, %v112_v5  ;;  %v4308_v10 = vcombine.low %v108_v3, %v112_v5  ;;  %v109_v11 = vld [vmem:[#allocation5 + $0x10] sm:$0xff]  ;;  %v453_v17 = vld [vmem:[#allocation8 + $0x1c0] sm:$0xff] }
  0x4d   :  { %v113_v12 = vld [vmem:[#allocation5 + $0x30] sm:$0xff]  ;;  %v110_v13 = vld [vmem:[#allocation5 + $0x18] sm:$0xff]  ;;  %v106_v14 = vpack.c.bf16 %v105_v8, %v104_v7  ;;  %v457_v18 = vld [vmem:[#allocation8 + $0x1e0] sm:$0xff] }
  0x4e   :  { %215 = vmatprep.subr.bf16.mxu0 %v4307_v4  ;;  %v4311_v15 = vcombine.high %v109_v11, %v113_v12  ;;  %v114_v16 = vld [vmem:[#allocation5 + $0x38] sm:$0xff]  ;;  %258 = vmatprep.subr.bf16.mxu1 %v4309_v9  ;;  %v4310_v19 = vcombine.low %v109_v11, %v113_v12  ;;  %v581_v21 = vld [vmem:[#allocation8 + $0x5c0] sm:$0xff]  ;;  %v4375_v24 = vcombine.high %v453_v17, %v457_v18 }
  0x4f   :  { %216 = vmatpush1.bf16.msra.mxu0 %v4306_v6  ;;  %v4313_v20 = vcombine.high %v110_v13, %v114_v16  ;;  %v585_v22 = vld [vmem:[#allocation8 + $0x5e0] sm:$0xff]  ;;  %259 = vmatpush1.bf16.msra.mxu1 %v4308_v10  ;;  %v4312_v23 = vcombine.low %v110_v13, %v114_v16  ;;  %v4374_v30 = vcombine.low %v453_v17, %v457_v18 }
  0x50   :  { %301 = vmatprep.subr.bf16.mxu0 %v4311_v15  ;;  %v4503_v25 = vcombine.high %v581_v21, %v585_v22  ;;  %v445_v26 = vld [vmem:[#allocation8 + $0x180] sm:$0xff]  ;;  %v4502_v31 = vcombine.low %v581_v21, %v585_v22 }
  0x51   :  { %344 = vmatprep.subr.bf16.mxu1 %v4313_v20  ;;  %v449_v27 = vld [vmem:[#allocation8 + $0x1a0] sm:$0xff] }
  0x52   :  { %4314 = vmatmul.mubr.msk.bf16.vlgmr.msra.gmra.mxu0 %vm197_vm0, %v106_v14  ;;  %4315 = vmatmul.mubr.msk.bf16.vlgmr.msra.gmra.mxu1 %vm197_vm0, %v106_v14  ;;  %v573_v28 = vld [vmem:[#allocation8 + $0x580] sm:$0xff]  ;;  %v4367_v32 = vcombine.high %v445_v26, %v449_v27  ;;  %v4366_v38 = vcombine.low %v445_v26, %v449_v27 }
  0x53   :  { %302 = vmatpush1.bf16.msra.mxu0 %v4310_v19  ;;  %319 = vmatprep.mubr.bf16.mxu0 %v4979_v0  ;;  %v577_v29 = vld [vmem:[#allocation8 + $0x5a0] sm:$0xff] }
  0x54   :  { %345 = vmatpush1.bf16.msra.mxu1 %v4312_v23  ;;  %362 = vmatprep.mubr.bf16.mxu1 %v4979_v0  ;;  %v4495_v33 = vcombine.high %v573_v28, %v577_v29  ;;  %v437_v34 = vld [vmem:[#allocation8 + $0x140] sm:$0xff]  ;;  %v4494_v39 = vcombine.low %v573_v28, %v577_v29 }
  0x55   :  { %3511 = vmatprep.subr.bf16.mxu0 %v4375_v24  ;;  %3554 = vmatprep.subr.bf16.mxu1 %v4503_v25  ;;  %v441_v35 = vld [vmem:[#allocation8 + $0x160] sm:$0xff] }
  0x56   :  { %v565_v36 = vld [vmem:[#allocation8 + $0x540] sm:$0xff]  ;;  %v4359_v40 = vcombine.high %v437_v34, %v441_v35  ;;  %v4358_v46 = vcombine.low %v437_v34, %v441_v35 }
  0x57   :  { %v569_v37 = vld [vmem:[#allocation8 + $0x560] sm:$0xff] }
  0x58   :  { %v4487_v41 = vcombine.high %v565_v36, %v569_v37  ;;  %v429_v42 = vld [vmem:[#allocation8 + $0x100] sm:$0xff]  ;;  %v4486_v47 = vcombine.low %v565_v36, %v569_v37 }
  0x59   :  { %v433_v43 = vld [vmem:[#allocation8 + $0x120] sm:$0xff] }
  0x5a   :  { %4316 = vmatmul.mubr.msk.bf16.vlgmr.msra.gmra.mxu0 %vm197_vm0, %v106_v14  ;;  %4317 = vmatmul.mubr.msk.bf16.vlgmr.msra.gmra.mxu1 %vm197_vm0, %v106_v14  ;;  %v557_v44 = vld [vmem:[#allocation8 + $0x500] sm:$0xff]  ;;  %v4351_v48 = vcombine.high %v429_v42, %v433_v43  ;;  %v4350_v54 = vcombine.low %v429_v42, %v433_v43 }
  0x5b   :  { %3512 = vmatpush1.bf16.msra.mxu0 %v4374_v30  ;;  %3555 = vmatpush1.bf16.msra.mxu1 %v4502_v31  ;;  %v561_v45 = vld [vmem:[#allocation8 + $0x520] sm:$0xff] }
  0x5c   :  { %3513 = vmatprep.subr.bf16.mxu0 %v4367_v32  ;;  %3556 = vmatprep.subr.bf16.mxu1 %v4495_v33  ;;  %v4479_v49 = vcombine.high %v557_v44, %v561_v45  ;;  %v421_v50 = vld [vmem:[#allocation8 + $0xc0] sm:$0xff]  ;;  %v4478_v55 = vcombine.low %v557_v44, %v561_v45 }
  0x5d   :  { %v425_v51 = vld [vmem:[#allocation8 + $0xe0] sm:$0xff] }
  0x5e   :  { %v549_v52 = vld [vmem:[#allocation8 + $0x4c0] sm:$0xff]  ;;  %v4343_v56 = vcombine.high %v421_v50, %v425_v51  ;;  %v4342_v62 = vcombine.low %v421_v50, %v425_v51 }
  0x5f   :  { %3514 = vmatpush1.bf16.msra.mxu0 %v4366_v38  ;;  %3557 = vmatpush1.bf16.msra.mxu1 %v4494_v39  ;;  %v553_v53 = vld [vmem:[#allocation8 + $0x4e0] sm:$0xff] }
  0x60   :  { %3515 = vmatprep.subr.bf16.mxu0 %v4359_v40  ;;  %3558 = vmatprep.subr.bf16.mxu1 %v4487_v41  ;;  %v4471_v57 = vcombine.high %v549_v52, %v553_v53  ;;  %v413_v58 = vld [vmem:[#allocation8 + $0x80] sm:$0xff]  ;;  %v4470_v63 = vcombine.low %v549_v52, %v553_v53 }
  0x61   :  { %v417_v59 = vld [vmem:[#allocation8 + $0xa0] sm:$0xff] }
  0x62   :  { %v541_v60 = vld [vmem:[#allocation8 + $0x480] sm:$0xff]  ;;  %v4335_v0 = vcombine.high %v413_v58, %v417_v59  ;;  %v4334_v6 = vcombine.low %v413_v58, %v417_v59 }
  0x63   :  { %3516 = vmatpush1.bf16.msra.mxu0 %v4358_v46  ;;  %3559 = vmatpush1.bf16.msra.mxu1 %v4486_v47  ;;  %v545_v61 = vld [vmem:[#allocation8 + $0x4a0] sm:$0xff] }
  0x64   :  { %3517 = vmatprep.subr.bf16.mxu0 %v4351_v48  ;;  %3560 = vmatprep.subr.bf16.mxu1 %v4479_v49  ;;  %v4463_v1 = vcombine.high %v541_v60, %v545_v61  ;;  %v405_v2 = vld [vmem:[#allocation8 + $0x40] sm:$0xff]  ;;  %v4462_v7 = vcombine.low %v541_v60, %v545_v61 }
  0x65   :  { %v409_v3 = vld [vmem:[#allocation8 + $0x60] sm:$0xff] }
  0x66   :  { %v533_v4 = vld [vmem:[#allocation8 + $0x440] sm:$0xff]  ;;  %v4327_v8 = vcombine.high %v405_v2, %v409_v3  ;;  %v4326_v14 = vcombine.low %v405_v2, %v409_v3 }
  0x67   :  { %3518 = vmatpush1.bf16.msra.mxu0 %v4350_v54  ;;  %3561 = vmatpush1.bf16.msra.mxu1 %v4478_v55  ;;  %v537_v5 = vld [vmem:[#allocation8 + $0x460] sm:$0xff] }
  0x68   :  { %3519 = vmatprep.subr.bf16.mxu0 %v4343_v56  ;;  %3562 = vmatprep.subr.bf16.mxu1 %v4471_v57  ;;  %v4455_v9 = vcombine.high %v533_v4, %v537_v5  ;;  %v397_v10 = vld [vmem:[#allocation8] sm:$0xff]  ;;  %v4454_v15 = vcombine.low %v533_v4, %v537_v5 }
  0x69   :  { %v401_v11 = vld [vmem:[#allocation8 + $0x20] sm:$0xff] }
  0x6a   :  { %v525_v12 = vld [vmem:[#allocation8 + $0x400] sm:$0xff]  ;;  %v4319_v16 = vcombine.high %v397_v10, %v401_v11  ;;  %v4318_v22 = vcombine.low %v397_v10, %v401_v11 }
  0x6b   :  { %3520 = vmatpush1.bf16.msra.mxu0 %v4342_v62  ;;  %3563 = vmatpush1.bf16.msra.mxu1 %v4470_v63  ;;  %v529_v13 = vld [vmem:[#allocation8 + $0x420] sm:$0xff] }
  0x6c   :  { %3521 = vmatprep.subr.bf16.mxu0 %v4335_v0  ;;  %3564 = vmatprep.subr.bf16.mxu1 %v4463_v1  ;;  %v4447_v17 = vcombine.high %v525_v12, %v529_v13  ;;  %v517_v18 = vld [vmem:[#allocation8 + $0x3c0] sm:$0xff]  ;;  %v4446_v23 = vcombine.low %v525_v12, %v529_v13 }
  0x6d   :  { %v521_v19 = vld [vmem:[#allocation8 + $0x3e0] sm:$0xff] }
  0x6e   :  { %v645_v20 = vld [vmem:[#allocation8 + $0x7c0] sm:$0xff]  ;;  %v4439_v24 = vcombine.high %v517_v18, %v521_v19  ;;  %v4438_v30 = vcombine.low %v517_v18, %v521_v19 }
  0x6f   :  { %3522 = vmatpush1.bf16.msra.mxu0 %v4334_v6  ;;  %3565 = vmatpush1.bf16.msra.mxu1 %v4462_v7  ;;  %v649_v21 = vld [vmem:[#allocation8 + $0x7e0] sm:$0xff] }
  0x70   :  { %3523 = vmatprep.subr.bf16.mxu0 %v4327_v8  ;;  %3566 = vmatprep.subr.bf16.mxu1 %v4455_v9  ;;  %v4567_v25 = vcombine.high %v645_v20, %v649_v21  ;;  %v509_v26 = vld [vmem:[#allocation8 + $0x380] sm:$0xff]  ;;  %v4566_v31 = vcombine.low %v645_v20, %v649_v21 }
  0x71   :  { %v513_v27 = vld [vmem:[#allocation8 + $0x3a0] sm:$0xff] }
  0x72   :  { %v637_v28 = vld [vmem:[#allocation8 + $0x780] sm:$0xff]  ;;  %v4431_v32 = vcombine.high %v509_v26, %v513_v27  ;;  %v4430_v38 = vcombine.low %v509_v26, %v513_v27 }
  0x73   :  { %3524 = vmatpush1.bf16.msra.mxu0 %v4326_v14  ;;  %3567 = vmatpush1.bf16.msra.mxu1 %v4454_v15  ;;  %v641_v29 = vld [vmem:[#allocation8 + $0x7a0] sm:$0xff] }
  0x74   :  { %3525 = vmatprep.subr.bf16.mxu0 %v4319_v16  ;;  %3568 = vmatprep.subr.bf16.mxu1 %v4447_v17  ;;  %v4559_v33 = vcombine.high %v637_v28, %v641_v29  ;;  %v501_v34 = vld [vmem:[#allocation8 + $0x340] sm:$0xff]  ;;  %v4558_v39 = vcombine.low %v637_v28, %v641_v29  ;;  %v117_v28 = vlaneseq }
  0x75   :  { %v505_v35 = vld [vmem:[#allocation8 + $0x360] sm:$0xff] }
  0x76   :  { %v629_v36 = vld [vmem:[#allocation8 + $0x740] sm:$0xff]  ;;  %v4423_v40 = vcombine.high %v501_v34, %v505_v35  ;;  %v4422_v46 = vcombine.low %v501_v34, %v505_v35  ;;  %v5058_v29 = vshrl.u32 %v117_v28, 7 }
  0x77   :  { %3526 = vmatpush1.bf16.msra.mxu0 %v4318_v22  ;;  %3569 = vmatpush1.bf16.msra.mxu1 %v4446_v23  ;;  %v633_v37 = vld [vmem:[#allocation8 + $0x760] sm:$0xff] }
  0x78   :  { %3527 = vmatprep.subr.bf16.mxu0 %v4439_v24  ;;  %3570 = vmatprep.subr.bf16.mxu1 %v4567_v25  ;;  %v4551_v41 = vcombine.high %v629_v36, %v633_v37  ;;  %v493_v42 = vld [vmem:[#allocation8 + $0x300] sm:$0xff]  ;;  %v4550_v47 = vcombine.low %v629_v36, %v633_v37  ;;  %v5072_v34 = vsub.s32 2, %v5058_v29 }
  0x79   :  { %v497_v43 = vld [vmem:[#allocation8 + $0x320] sm:$0xff] }
  0x7a   :  { %v621_v44 = vld [vmem:[#allocation8 + $0x700] sm:$0xff]  ;;  %v4415_v48 = vcombine.high %v493_v42, %v497_v43  ;;  %v4414_v54 = vcombine.low %v493_v42, %v497_v43  ;;  %v5083_v43 = vsub.s32 5, %v5058_v29 }
  0x7b   :  { %3528 = vmatpush2.bf16.msra.mxu0 %v4438_v30  ;;  %3571 = vmatpush2.bf16.msra.mxu1 %v4566_v31  ;;  %v625_v45 = vld [vmem:[#allocation8 + $0x720] sm:$0xff]  ;;  %v5061_v30 = vsub.s32 1, %v5058_v29  ;;  %v5064_v31 = vsub.s32 0, %v5058_v29 }
  0x7c   :  { %3529 = vmatprep.subr.bf16.mxu0 %v4431_v32  ;;  %3572 = vmatprep.subr.bf16.mxu1 %v4559_v33  ;;  %v4543_v49 = vcombine.high %v621_v44, %v625_v45  ;;  %v485_v50 = vld [vmem:[#allocation8 + $0x2c0] sm:$0xff]  ;;  %v4542_v55 = vcombine.low %v621_v44, %v625_v45  ;;  %v5067_v32 = vsub.s32 3, %v5058_v29  ;;  %v5069_v33 = vld [vmem:[#allocation7] sm:$0xff]  ;;  %v5086_v45 = vsub.s32 7, %v5058_v29 }
  0x7d   :  { %v489_v51 = vld [vmem:[#allocation8 + $0x2e0] sm:$0xff]  ;;  %v124_v37 = vrot.slane %v5069_v33, %v5061_v30 }
  0x7e   :  { %v613_v52 = vld [vmem:[#allocation8 + $0x6c0] sm:$0xff]  ;;  %v4407_v56 = vcombine.high %v485_v50, %v489_v51  ;;  %v4406_v58 = vcombine.low %v485_v50, %v489_v51  ;;  %5262 = vst [vmem:[#allocation17_spill] sm:$0xff] %v5067_v32  ;;  %5263 = vst [vmem:[#allocation18_spill] sm:$0xff] %v5086_v45 }
  0x7f   :  { %3530 = vmatpush2.bf16.msra.mxu0 %v4430_v38  ;;  %3573 = vmatpush2.bf16.msra.mxu1 %v4558_v39  ;;  %v617_v53 = vld [vmem:[#allocation8 + $0x6e0] sm:$0xff]  ;;  %v120_v38 = vrot.slane %v5069_v33, %v5064_v31 }
  0x80   :  { %3531 = vmatprep.subr.bf16.mxu0 %v4423_v40  ;;  %3574 = vmatprep.subr.bf16.mxu1 %v4551_v41  ;;  %v4535_v57 = vcombine.high %v613_v52, %v617_v53  ;;  %v4534_v59 = vcombine.low %v613_v52, %v617_v53  ;;  %v477_v60 = vld [vmem:[#allocation8 + $0x280] sm:$0xff]  ;;  %v132_v40 = vrot.slane %v5069_v33, %v5067_v32 }
  0x81   :  { %v481_v61 = vld [vmem:[#allocation8 + $0x2a0] sm:$0xff]  ;;  %v128_v41 = vrot.slane %v5069_v33, %v5072_v34 }
  0x82   :  { %v605_v62 = vld [vmem:[#allocation8 + $0x680] sm:$0xff]  ;;  %v4399_v63 = vcombine.high %v477_v60, %v481_v61  ;;  %v4398_v1 = vcombine.low %v477_v60, %v481_v61  ;;  %v148_v60 = vrot.slane %v5069_v33, %v5086_v45 }
  0x83   :  { %3532 = vmatpush2.bf16.msra.mxu0 %v4422_v46  ;;  %3575 = vmatpush2.bf16.msra.mxu1 %v4550_v47  ;;  %v609_v0 = vld [vmem:[#allocation8 + $0x6a0] sm:$0xff] }
  0x84   :  { %3533 = vmatprep.subr.bf16.mxu0 %v4415_v48  ;;  %3576 = vmatprep.subr.bf16.mxu1 %v4543_v49  ;;  %v4526_v2 = vcombine.low %v605_v62, %v609_v0  ;;  %v4527_v3 = vcombine.high %v605_v62, %v609_v0  ;;  %v469_v4 = vld [vmem:[#allocation8 + $0x240] sm:$0xff] }
  0x85   :  { %v473_v5 = vld [vmem:[#allocation8 + $0x260] sm:$0xff] }
  0x86   :  { %v597_v6 = vld [vmem:[#allocation8 + $0x640] sm:$0xff]  ;;  %v4391_v7 = vcombine.high %v469_v4, %v473_v5  ;;  %v4390_v9 = vcombine.low %v469_v4, %v473_v5 }
  0x87   :  { %3534 = vmatpush2.bf16.msra.mxu0 %v4414_v54  ;;  %3577 = vmatpush2.bf16.msra.mxu1 %v4542_v55  ;;  %v601_v8 = vld [vmem:[#allocation8 + $0x660] sm:$0xff] }
  0x88   :  { %3535 = vmatprep.subr.bf16.mxu0 %v4407_v56  ;;  %3578 = vmatprep.subr.bf16.mxu1 %v4535_v57  ;;  %v4518_v10 = vcombine.low %v597_v6, %v601_v8  ;;  %v4519_v11 = vcombine.high %v597_v6, %v601_v8  ;;  %v461_v12 = vld [vmem:[#allocation8 + $0x200] sm:$0xff]  ;;  %v140_v56 = vrot.slane %v5069_v33, %v5083_v43 }
  0x89   :  { %v465_v13 = vld [vmem:[#allocation8 + $0x220] sm:$0xff] }
  0x8a   :  { %v589_v14 = vld [vmem:[#allocation8 + $0x600] sm:$0xff]  ;;  %v4383_v15 = vcombine.high %v461_v12, %v465_v13  ;;  %v4382_v17 = vcombine.low %v461_v12, %v465_v13 }
  0x8b   :  { %3536 = vmatpush2.bf16.msra.mxu0 %v4406_v58  ;;  %3579 = vmatpush2.bf16.msra.mxu1 %v4534_v59  ;;  %v593_v16 = vld [vmem:[#allocation8 + $0x620] sm:$0xff] }
  0x8c   :  { %3537 = vmatprep.subr.bf16.mxu0 %v4399_v63  ;;  %3580 = vmatprep.subr.bf16.mxu1 %v4527_v3  ;;  %v4510_v18 = vcombine.low %v589_v14, %v593_v16  ;;  %v4511_v19 = vcombine.high %v589_v14, %v593_v16  ;;  %v5042_v20 = vld [vmem:[#allocation8 + $0x9c0] sm:$0xff] }
  0x8d   :  { %v5044_v21 = vld [vmem:[#allocation8 + $0x9e0] sm:$0xff] }
  0x8e   :  { %v5046_v22 = vld [vmem:[#allocation8 + $0xdc0] sm:$0xff]  ;;  %v4631_v23 = vcombine.high %v5042_v20, %v5044_v21  ;;  %v4630_v25 = vcombine.low %v5042_v20, %v5044_v21 }
  0x8f   :  { %3538 = vmatpush2.bf16.msra.mxu0 %v4398_v1  ;;  %3581 = vmatpush2.bf16.msra.mxu1 %v4526_v2  ;;  %v5050_v24 = vld [vmem:[#allocation8 + $0xde0] sm:$0xff] }
  0x90   :  { %3539 = vmatprep.subr.bf16.mxu0 %v4391_v7  ;;  %3582 = vmatprep.subr.bf16.mxu1 %v4519_v11  ;;  %v4758_v26 = vcombine.low %v5046_v22, %v5050_v24  ;;  %v4759_v27 = vcombine.high %v5046_v22, %v5050_v24  ;;  %v701_v0 = vld [vmem:[#allocation8 + $0x980] sm:$0xff] }
  0x91   :  { %v705_v1 = vld [vmem:[#allocation8 + $0x9a0] sm:$0xff] }
  0x92   :  { %v829_v6 = vld [vmem:[#allocation8 + $0xd80] sm:$0xff] }
  0x93   :  { %3540 = vmatpush2.bf16.msra.mxu0 %v4390_v9  ;;  %3583 = vmatpush2.bf16.msra.mxu1 %v4518_v10  ;;  %v833_v7 = vld [vmem:[#allocation8 + $0xda0] sm:$0xff] }
  0x94   :  { %3541 = vmatprep.subr.bf16.mxu0 %v4383_v15  ;;  %3584 = vmatprep.subr.bf16.mxu1 %v4511_v19  ;;  %v4623_v15 = vcombine.high %v701_v0, %v705_v1  ;;  %v4751_v19 = vcombine.high %v829_v6, %v833_v7  ;;  %v813_v20 = vld [vmem:[#allocation8 + $0xd00] sm:$0xff] }
  0x95   :  { %v817_v21 = vld [vmem:[#allocation8 + $0xd20] sm:$0xff] }
  0x97   :  { %3542 = vmatpush2.bf16.msra.mxu0 %v4382_v17  ;;  %3585 = vmatpush2.bf16.msra.mxu1 %v4510_v18 }
  0x98   :  { %3597 = vmatprep.subr.bf16.mxu0 %v4631_v23  ;;  %3640 = vmatprep.subr.bf16.mxu1 %v4759_v27  ;;  %v693_v23 = vld [vmem:[#allocation8 + $0x940] sm:$0xff] }
  0x99   :  { %v697_v27 = vld [vmem:[#allocation8 + $0x960] sm:$0xff] }
 0x112   :  { %v235_v35 = vpop.f32.mrf.mxu0  ;;  %v278_v36 = vpop.f32.mrf.mxu1 }
 0x113   :  { %v236_v49 = vadd.f32 %v235_v35, %v120_v38  ;;  %v279_v53 = vadd.f32 %v278_v36, %v128_v41  ;;  %v821_v35 = vld [vmem:[#allocation8 + $0xd40] sm:$0xff] }
 0x114   :  { %v237_v39 = vpop.f32.mrf.mxu0  ;;  %v280_v42 = vpop.f32.mrf.mxu1  ;;  %v825_v36 = vld [vmem:[#allocation8 + $0xd60] sm:$0xff] }
 0x115   :  { %v238_v46 = vadd.f32 %v237_v39, %v124_v37  ;;  %v281_v50 = vadd.f32 %v280_v42, %v132_v40  ;;  %v373_v3 = vmax.f32 %v236_v49, 0.0  ;;  %v375_v9 = vmax.f32 %v279_v53, 0.0  ;;  %v685_v49 = vld [vmem:[#allocation8 + $0x900] sm:$0xff] }
 0x116   :  { %v239_v44 = vpop.f32.mrf.mxu0  ;;  %v282_v48 = vpop.f32.mrf.mxu1  ;;  %v4750_v42 = vcombine.low %v829_v6, %v833_v7  ;;  %v4742_v22 = vcombine.low %v821_v35, %v825_v36 }
 0x117   :  { %v240_v47 = vadd.f32 %v239_v44, %v120_v38  ;;  %v283_v51 = vadd.f32 %v282_v48, %v128_v41  ;;  %v374_v61 = vmax.f32 %v238_v46, 0.0  ;;  %v376_v4 = vmax.f32 %v281_v50, 0.0  ;;  %v689_v50 = vld [vmem:[#allocation8 + $0x920] sm:$0xff] }
 0x118   :  { %v241_v52 = vpop.f32.mrf.mxu0  ;;  %v284_v55 = vpop.f32.mrf.mxu1  ;;  %v4622_v38 = vcombine.low %v701_v0, %v705_v1  ;;  %v4615_v44 = vcombine.high %v693_v23, %v697_v27  ;;  %v4743_v48 = vcombine.high %v821_v35, %v825_v36  ;;  %v4607_v24 = vcombine.high %v685_v49, %v689_v50  ;;  %v669_v0 = vld [vmem:[#allocation8 + $0x880] sm:$0xff] }
 0x119   :  { %v242_v54 = vadd.f32 %v241_v52, %v124_v37  ;;  %v381_v57 = vmax.f32 %v240_v47, 0.0  ;;  %v285_v58 = vadd.f32 %v284_v55, %v132_v40  ;;  %v383_v62 = vmax.f32 %v283_v51, 0.0  ;;  %v677_v55 = vld [vmem:[#allocation8 + $0x8c0] sm:$0xff] }
 0x11a   :  { %v5090_v59 = vpop.f32.mrf.mxu0  ;;  %v5094_v2 = vpop.f32.mrf.mxu1  ;;  %v4614_v52 = vcombine.low %v693_v23, %v697_v27  ;;  %v673_v1 = vld [vmem:[#allocation8 + $0x8a0] sm:$0xff] }
 0x11b   :  { %v382_v63 = vmax.f32 %v242_v54, 0.0  ;;  %v384_v5 = vmax.f32 %v285_v58, 0.0  ;;  %v5098_v13 = vpack.c.bf16 %v381_v57, %v373_v3  ;;  %v5104_v18 = vpack.c.bf16 %v383_v62, %v375_v9  ;;  %v805_v57 = vld [vmem:[#allocation8 + $0xcc0] sm:$0xff] }
 0x11c   :  { %v323_v8 = vpop.f32.mrf.mxu0  ;;  %v366_v12 = vpop.f32.mrf.mxu1  ;;  %v4735_v54 = vcombine.high %v813_v20, %v817_v21  ;;  %v809_v58 = vld [vmem:[#allocation8 + $0xce0] sm:$0xff]  ;;  %v4591_v7 = vcombine.high %v669_v0, %v673_v1 }
 0x11d   :  { %v5096_v10 = vpack.c.bf16 %v382_v63, %v374_v61  ;;  %v324_v11 = vadd.f32 %v323_v8, %v140_v56  ;;  %v5100_v14 = vpack.c.bf16 %v384_v5, %v376_v4  ;;  %v367_v17 = vadd.f32 %v366_v12, %v148_v60  ;;  %v797_v3 = vld [vmem:[#allocation8 + $0xc80] sm:$0xff] }
 0x11e   :  { %v5102_v16 = vpop.f32.mrf.mxu0  ;;  %v5107_v28 = vpop.f32.mrf.mxu1  ;;  %v4734_v61 = vcombine.low %v813_v20, %v817_v21  ;;  %v4727_v63 = vcombine.high %v805_v57, %v809_v58  ;;  %v801_v4 = vld [vmem:[#allocation8 + $0xca0] sm:$0xff]  ;;  %v4726_v6 = vcombine.low %v805_v57, %v809_v58 }
 0x11f   :  { %3543 = vmatprep.mubr.bf16.mxu0 %v5096_v10  ;;  %3586 = vmatprep.mubr.bf16.mxu1 %v5100_v14  ;;  %v378_v39 = vmax.f32 %v324_v11, 0.0  ;;  %v380_v46 = vmax.f32 %v367_v17, 0.0  ;;  %v4719_v8 = vcombine.high %v797_v3, %v801_v4  ;;  %v661_v9 = vld [vmem:[#allocation8 + $0x840] sm:$0xff]  ;;  %v4590_v17 = vcombine.low %v669_v0, %v673_v1 }
 0x120   :  { %3544 = vmatmul.mubr.bf16.vlgmr.msra.gmra.mxu0 %v5098_v13  ;;  %v327_v37 = vpop.f32.mrf.mxu0  ;;  %3587 = vmatmul.mubr.bf16.vlgmr.msra.gmra.mxu1 %v5104_v18  ;;  %v370_v41 = vpop.f32.mrf.mxu1  ;;  %v665_v11 = vld [vmem:[#allocation8 + $0x860] sm:$0xff] }
 0x121   :  { %3598 = vmatpush1.bf16.msra.mxu0 %v4630_v25  ;;  %v328_v40 = vadd.f32 %v327_v37, %v140_v56  ;;  %3641 = vmatpush1.bf16.msra.mxu1 %v4758_v26  ;;  %v371_v47 = vadd.f32 %v370_v41, %v148_v60  ;;  %v681_v56 = vld [vmem:[#allocation8 + $0x8e0] sm:$0xff]  ;;  %v4606_v60 = vcombine.low %v685_v49, %v689_v50 }
 0x122   :  { %3599 = vmatprep.subr.bf16.mxu0 %v4623_v15  ;;  %3642 = vmatprep.subr.bf16.mxu1 %v4751_v19  ;;  %v4599_v62 = vcombine.high %v677_v55, %v681_v56  ;;  %v4598_v5 = vcombine.low %v677_v55, %v681_v56  ;;  %v789_v12 = vld [vmem:[#allocation8 + $0xc40] sm:$0xff]  ;;  %v4718_v19 = vcombine.low %v797_v3, %v801_v4 }
 0x123   :  { %v386_v51 = vmax.f32 %v328_v40, 0.0  ;;  %v388_v25 = vmax.f32 %v371_v47, 0.0  ;;  %v793_v15 = vld [vmem:[#allocation8 + $0xc60] sm:$0xff]  ;;  %v4583_v23 = vcombine.high %v661_v9, %v665_v11 }
 0x124   :  { %v4711_v27 = vcombine.high %v789_v12, %v793_v15  ;;  %v653_v35 = vld [vmem:[#allocation8 + $0x800] sm:$0xff]  ;;  %v4710_v40 = vcombine.low %v789_v12, %v793_v15 }
 0x125   :  { %3600 = vmatpush1.bf16.msra.mxu0 %v4622_v38  ;;  %v5118_v53 = vpack.c.bf16 %v386_v51, %v378_v39  ;;  %3643 = vmatpush1.bf16.msra.mxu1 %v4750_v42  ;;  %v5120_v26 = vpack.c.bf16 %v388_v25, %v380_v46  ;;  %v657_v36 = vld [vmem:[#allocation8 + $0x820] sm:$0xff]  ;;  %v4582_v39 = vcombine.low %v661_v9, %v665_v11 }
 0x126   :  { %3601 = vmatprep.subr.bf16.mxu0 %v4615_v44  ;;  %3644 = vmatprep.subr.bf16.mxu1 %v4743_v48  ;;  %v781_v37 = vld [vmem:[#allocation8 + $0xc00] sm:$0xff]  ;;  %v4575_v41 = vcombine.high %v653_v35, %v657_v36  ;;  %v4574_v49 = vcombine.low %v653_v35, %v657_v36 }
 0x127   :  { %3629 = vmatprep.mubr.bf16.mxu0 %v5118_v53  ;;  %3672 = vmatprep.mubr.bf16.mxu1 %v5120_v26  ;;  %v785_v38 = vld [vmem:[#allocation8 + $0xc20] sm:$0xff] }
 0x128   :  { %v4703_v42 = vcombine.high %v781_v37, %v785_v38  ;;  %v773_v44 = vld [vmem:[#allocation8 + $0xbc0] sm:$0xff]  ;;  %v4702_v50 = vcombine.low %v781_v37, %v785_v38 }
 0x129   :  { %3602 = vmatpush1.bf16.msra.mxu0 %v4614_v52  ;;  %3645 = vmatpush1.bf16.msra.mxu1 %v4742_v22  ;;  %v777_v46 = vld [vmem:[#allocation8 + $0xbe0] sm:$0xff] }
 0x12a   :  { %3603 = vmatprep.subr.bf16.mxu0 %v4607_v24  ;;  %3646 = vmatprep.subr.bf16.mxu1 %v4735_v54  ;;  %v901_v47 = vld [vmem:[#allocation8 + $0xfc0] sm:$0xff]  ;;  %v4695_v51 = vcombine.high %v773_v44, %v777_v46  ;;  %v4694_v24 = vcombine.low %v773_v44, %v777_v46 }
 0x12b   :  { %v905_v48 = vld [vmem:[#allocation8 + $0xfe0] sm:$0xff] }
 0x12c   :  { %v4823_v20 = vcombine.high %v901_v47, %v905_v48  ;;  %v765_v21 = vld [vmem:[#allocation8 + $0xb80] sm:$0xff]  ;;  %v4822_v54 = vcombine.low %v901_v47, %v905_v48  ;;  %v5128_v47 = vsub.s32 6, %v5058_v29 }
 0x12d   :  { %3604 = vmatpush1.bf16.msra.mxu0 %v4606_v60  ;;  %3647 = vmatpush1.bf16.msra.mxu1 %v4734_v61  ;;  %v769_v25 = vld [vmem:[#allocation8 + $0xba0] sm:$0xff] }
 0x12e   :  { %3605 = vmatprep.subr.bf16.mxu0 %v4599_v62  ;;  %3648 = vmatprep.subr.bf16.mxu1 %v4727_v63  ;;  %v893_v52 = vld [vmem:[#allocation8 + $0xf80] sm:$0xff]  ;;  %v4687_v55 = vcombine.high %v765_v21, %v769_v25  ;;  %v4686_v62 = vcombine.low %v765_v21, %v769_v25  ;;  %5264 = vst [vmem:[#allocation19_spill] sm:$0xff] %v5128_v47 }
 0x12f   :  { %v897_v22 = vld [vmem:[#allocation8 + $0xfa0] sm:$0xff] }
 0x130   :  { %v4815_v56 = vcombine.high %v893_v52, %v897_v22  ;;  %v757_v57 = vld [vmem:[#allocation8 + $0xb40] sm:$0xff]  ;;  %v4814_v63 = vcombine.low %v893_v52, %v897_v22 }
 0x131   :  { %3606 = vmatpush1.bf16.msra.mxu0 %v4598_v5  ;;  %3649 = vmatpush1.bf16.msra.mxu1 %v4726_v6  ;;  %v761_v58 = vld [vmem:[#allocation8 + $0xb60] sm:$0xff] }
 0x132   :  { %3607 = vmatprep.subr.bf16.mxu0 %v4591_v7  ;;  %3650 = vmatprep.subr.bf16.mxu1 %v4719_v8  ;;  %v885_v60 = vld [vmem:[#allocation8 + $0xf40] sm:$0xff]  ;;  %v4679_v0 = vcombine.high %v757_v57, %v761_v58  ;;  %v4678_v7 = vcombine.low %v757_v57, %v761_v58 }
 0x133   :  { %v889_v61 = vld [vmem:[#allocation8 + $0xf60] sm:$0xff] }
 0x134   :  { %v4807_v1 = vcombine.high %v885_v60, %v889_v61  ;;  %v749_v3 = vld [vmem:[#allocation8 + $0xb00] sm:$0xff]  ;;  %v4806_v8 = vcombine.low %v885_v60, %v889_v61 }
 0x135   :  { %3608 = vmatpush1.bf16.msra.mxu0 %v4590_v17  ;;  %3651 = vmatpush1.bf16.msra.mxu1 %v4718_v19  ;;  %v753_v4 = vld [vmem:[#allocation8 + $0xb20] sm:$0xff] }
 0x136   :  { %3609 = vmatprep.subr.bf16.mxu0 %v4583_v23  ;;  %3652 = vmatprep.subr.bf16.mxu1 %v4711_v27  ;;  %v877_v5 = vld [vmem:[#allocation8 + $0xf00] sm:$0xff]  ;;  %v4671_v9 = vcombine.high %v749_v3, %v753_v4  ;;  %v4670_v23 = vcombine.low %v749_v3, %v753_v4  ;;  %v454_v3 = vld [vmem:[#allocation8 + $0x1c8] sm:$0xff] }
 0x137   :  { %v881_v6 = vld [vmem:[#allocation8 + $0xf20] sm:$0xff]  ;;  %v458_v4 = vld [vmem:[#allocation8 + $0x1e8] sm:$0xff] }
 0x138   :  { %v4799_v11 = vcombine.high %v877_v5, %v881_v6  ;;  %v741_v12 = vld [vmem:[#allocation8 + $0xac0] sm:$0xff]  ;;  %v4798_v27 = vcombine.low %v877_v5, %v881_v6  ;;  %v582_v5 = vld [vmem:[#allocation8 + $0x5c8] sm:$0xff] }
 0x139   :  { %3610 = vmatpush1.bf16.msra.mxu0 %v4582_v39  ;;  %3653 = vmatpush1.bf16.msra.mxu1 %v4710_v40  ;;  %v745_v15 = vld [vmem:[#allocation8 + $0xae0] sm:$0xff]  ;;  %v586_v6 = vld [vmem:[#allocation8 + $0x5e8] sm:$0xff] }
 0x13a   :  { %3611 = vmatprep.subr.bf16.mxu0 %v4575_v41  ;;  %3654 = vmatprep.subr.bf16.mxu1 %v4703_v42  ;;  %v869_v17 = vld [vmem:[#allocation8 + $0xec0] sm:$0xff]  ;;  %v4663_v35 = vcombine.high %v741_v12, %v745_v15  ;;  %v4662_v41 = vcombine.low %v741_v12, %v745_v15  ;;  %v5125_v42 = vsub.s32 4, %v5058_v29  ;;  %v446_v15 = vld [vmem:[#allocation8 + $0x188] sm:$0xff] }
 0x13b   :  { %v873_v19 = vld [vmem:[#allocation8 + $0xee0] sm:$0xff] }
 0x13c   :  { %v4791_v36 = vcombine.high %v869_v17, %v873_v19  ;;  %v733_v37 = vld [vmem:[#allocation8 + $0xa80] sm:$0xff]  ;;  %v4790_v44 = vcombine.low %v869_v17, %v873_v19  ;;  %v136_v25 = vrot.slane %v5069_v33, %v5125_v42  ;;  %v4376_v17 = vcombine.low %v454_v3, %v458_v4  ;;  %v574_v19 = vld [vmem:[#allocation8 + $0x588] sm:$0xff] }
 0x13d   :  { %3612 = vmatpush1.bf16.msra.mxu0 %v4574_v49  ;;  %3655 = vmatpush1.bf16.msra.mxu1 %v4702_v50  ;;  %v737_v38 = vld [vmem:[#allocation8 + $0xaa0] sm:$0xff] }
 0x13e   :  { %3613 = vmatprep.subr.bf16.mxu0 %v4695_v51  ;;  %3656 = vmatprep.subr.bf16.mxu1 %v4823_v20  ;;  %v861_v39 = vld [vmem:[#allocation8 + $0xe80] sm:$0xff]  ;;  %v4655_v46 = vcombine.high %v733_v37, %v737_v38  ;;  %v4654_v21 = vcombine.low %v733_v37, %v737_v38  ;;  %v322_v61 = vadd.f32 %v5090_v59, %v136_v25  ;;  %v438_v38 = vld [vmem:[#allocation8 + $0x148] sm:$0xff] }
 0x13f   :  { %v865_v40 = vld [vmem:[#allocation8 + $0xea0] sm:$0xff] }
 0x140   :  { %v4783_v48 = vcombine.high %v861_v39, %v865_v40  ;;  %v725_v49 = vld [vmem:[#allocation8 + $0xa40] sm:$0xff]  ;;  %v4782_v52 = vcombine.low %v861_v39, %v865_v40  ;;  %v442_v39 = vld [vmem:[#allocation8 + $0x168] sm:$0xff] }
 0x141   :  { %3614 = vmatpush2.bf16.msra.mxu0 %v4694_v24  ;;  %3657 = vmatpush2.bf16.msra.mxu1 %v4822_v54  ;;  %v729_v50 = vld [vmem:[#allocation8 + $0xa60] sm:$0xff]  ;;  %v144_v24 = vrot.slane %v5069_v33, %v5128_v47 }
 0x142   :  { %3615 = vmatprep.subr.bf16.mxu0 %v4687_v55  ;;  %3658 = vmatprep.subr.bf16.mxu1 %v4815_v56  ;;  %v853_v51 = vld [vmem:[#allocation8 + $0xe40] sm:$0xff]  ;;  %v4647_v22 = vcombine.high %v725_v49, %v729_v50  ;;  %v4646_v58 = vcombine.low %v725_v49, %v729_v50  ;;  %v4361_v49 = vcombine.high %v438_v38, %v442_v39 }
 0x143   :  { %v857_v20 = vld [vmem:[#allocation8 + $0xe60] sm:$0xff]  ;;  %v369_v33 = vadd.f32 %v5107_v28, %v144_v24  ;;  %v450_v28 = vld [vmem:[#allocation8 + $0x1a8] sm:$0xff] }
 0x144   :  { %v4775_v29 = vcombine.high %v853_v51, %v857_v20  ;;  %v717_v54 = vld [vmem:[#allocation8 + $0xa00] sm:$0xff]  ;;  %v4774_v60 = vcombine.low %v853_v51, %v857_v20  ;;  %v4369_v37 = vcombine.high %v446_v15, %v450_v28  ;;  %v430_v51 = vld [vmem:[#allocation8 + $0x108] sm:$0xff] }
 0x145   :  { %3616 = vmatpush2.bf16.msra.mxu0 %v4686_v62  ;;  %3659 = vmatpush2.bf16.msra.mxu1 %v4814_v63  ;;  %v721_v55 = vld [vmem:[#allocation8 + $0xa20] sm:$0xff]  ;;  %v326_v62 = vadd.f32 %v5102_v16, %v136_v25  ;;  %v4377_v16 = vcombine.high %v454_v3, %v458_v4  ;;  %v387_v12 = vmax.f32 %v369_v33, 0.0  ;;  %v434_v20 = vld [vmem:[#allocation8 + $0x128] sm:$0xff] }
 0x146   :  { %3617 = vmatprep.subr.bf16.mxu0 %v4679_v0  ;;  %3660 = vmatprep.subr.bf16.mxu1 %v4807_v1  ;;  %v845_v56 = vld [vmem:[#allocation8 + $0xe00] sm:$0xff]  ;;  %v4639_v63 = vcombine.high %v717_v54, %v721_v55  ;;  %v365_v0 = vadd.f32 %v5094_v2, %v144_v24  ;;  %v4505_v2 = vcombine.high %v582_v5, %v586_v6  ;;  %v562_v25 = vld [vmem:[#allocation8 + $0x528] sm:$0xff] }
 0x147   :  { %v849_v57 = vld [vmem:[#allocation8 + $0xe20] sm:$0xff]  ;;  %v4353_v24 = vcombine.high %v430_v51, %v434_v20  ;;  %v542_v33 = vld [vmem:[#allocation8 + $0x488] sm:$0xff] }
 0x148   :  { %v4767_v1 = vcombine.high %v845_v56, %v849_v57  ;;  %v4766_v59 = vcombine.low %v845_v56, %v849_v57  ;;  %v550_v56 = vld [vmem:[#allocation8 + $0x4c8] sm:$0xff] }
 0x149   :  { %3618 = vmatpush2.bf16.msra.mxu0 %v4678_v7  ;;  %3661 = vmatpush2.bf16.msra.mxu1 %v4806_v8  ;;  %v4638_v7 = vcombine.low %v717_v54, %v721_v55  ;;  %v377_v8 = vmax.f32 %v322_v61, 0.0  ;;  %v422_v54 = vld [vmem:[#allocation8 + $0xc8] sm:$0xff] }
 0x14a   :  { %3619 = vmatprep.subr.bf16.mxu0 %v4671_v9  ;;  %3662 = vmatprep.subr.bf16.mxu1 %v4799_v11  ;;  %v385_v9 = vmax.f32 %v326_v62, 0.0  ;;  %v379_v11 = vmax.f32 %v365_v0, 0.0  ;;  %v426_v55 = vld [vmem:[#allocation8 + $0xe8] sm:$0xff] }
 0x14b   :  { %v554_v57 = vld [vmem:[#allocation8 + $0x4e8] sm:$0xff]  ;;  %v4345_v61 = vcombine.high %v422_v54, %v426_v55  ;;  %v4344_v3 = vcombine.low %v422_v54, %v426_v55 }
 0x14c   :  { %v4473_v62 = vcombine.high %v550_v56, %v554_v57  ;;  %v418_v0 = vld [vmem:[#allocation8 + $0xa8] sm:$0xff]  ;;  %v4472_v4 = vcombine.low %v550_v56, %v554_v57 }
 0x14d   :  { %3620 = vmatpush2.bf16.msra.mxu0 %v4670_v23  ;;  %3663 = vmatpush2.bf16.msra.mxu1 %v4798_v27  ;;  %v578_v23 = vld [vmem:[#allocation8 + $0x5a8] sm:$0xff]  ;;  %v5138_v27 = vpack.c.bf16 %v385_v9, %v377_v8 }
 0x14e   :  { %3621 = vmatprep.subr.bf16.mxu0 %v4663_v35  ;;  %3664 = vmatprep.subr.bf16.mxu1 %v4791_v36  ;;  %v4504_v35 = vcombine.low %v582_v5, %v586_v6  ;;  %v5140_v36 = vpack.c.bf16 %v387_v12, %v379_v11  ;;  %v4497_v40 = vcombine.high %v574_v19, %v578_v23  ;;  %v410_v8 = vld [vmem:[#allocation8 + $0x68] sm:$0xff] }
 0x14f   :  { %v534_v9 = vld [vmem:[#allocation8 + $0x448] sm:$0xff] }
 0x150   :  { %v502_v54 = vld [vmem:[#allocation8 + $0x348] sm:$0xff] }
 0x151   :  { %3622 = vmatpush2.bf16.msra.mxu0 %v4662_v41  ;;  %3665 = vmatpush2.bf16.msra.mxu1 %v4790_v44  ;;  %v566_v41 = vld [vmem:[#allocation8 + $0x548] sm:$0xff] }
 0x152   :  { %3623 = vmatprep.subr.bf16.mxu0 %v4655_v46  ;;  %3666 = vmatprep.subr.bf16.mxu1 %v4783_v48  ;;  %v570_v44 = vld [vmem:[#allocation8 + $0x568] sm:$0xff]  ;;  %v4368_v46 = vcombine.low %v446_v15, %v450_v28  ;;  %v4496_v48 = vcombine.low %v574_v19, %v578_v23 }
 0x153   :  { %v4489_v50 = vcombine.high %v566_v41, %v570_v44  ;;  %v398_v15 = vld [vmem:[#allocation8 + $0x8] sm:$0xff] }
 0x154   :  { %v402_v28 = vld [vmem:[#allocation8 + $0x28] sm:$0xff] }
 0x155   :  { %3624 = vmatpush2.bf16.msra.mxu0 %v4654_v21  ;;  %3667 = vmatpush2.bf16.msra.mxu1 %v4782_v52  ;;  %v558_v21 = vld [vmem:[#allocation8 + $0x508] sm:$0xff]  ;;  %v4360_v52 = vcombine.low %v438_v38, %v442_v39 }
 0x156   :  { %3625 = vmatprep.subr.bf16.mxu0 %v4647_v22  ;;  %3668 = vmatprep.subr.bf16.mxu1 %v4775_v29  ;;  %v4488_v22 = vcombine.low %v566_v41, %v570_v44  ;;  %v4481_v29 = vcombine.high %v558_v21, %v562_v25  ;;  %v530_v19 = vld [vmem:[#allocation8 + $0x428] sm:$0xff] }
 0x157   :  { %v518_v39 = vld [vmem:[#allocation8 + $0x3c8] sm:$0xff] }
 0x158   :  { %v646_v41 = vld [vmem:[#allocation8 + $0x7c8] sm:$0xff] }
 0x159   :  { %3626 = vmatpush2.bf16.msra.mxu0 %v4646_v58  ;;  %3669 = vmatpush2.bf16.msra.mxu1 %v4774_v60  ;;  %v4352_v58 = vcombine.low %v430_v51, %v434_v20  ;;  %v4480_v60 = vcombine.low %v558_v21, %v562_v25  ;;  %v650_v44 = vld [vmem:[#allocation8 + $0x7e8] sm:$0xff] }
 0x15a   :  { %3627 = vmatprep.subr.bf16.mxu0 %v4639_v63  ;;  %3670 = vmatprep.subr.bf16.mxu1 %v4767_v1  ;;  %v414_v63 = vld [vmem:[#allocation8 + $0x88] sm:$0xff] }
 0x15b   :  { %v546_v1 = vld [vmem:[#allocation8 + $0x4a8] sm:$0xff]  ;;  %v4337_v5 = vcombine.high %v414_v63, %v418_v0 }
 0x15c   :  { %v4465_v6 = vcombine.high %v542_v33, %v546_v1  ;;  %v4464_v11 = vcombine.low %v542_v33, %v546_v1  ;;  %v510_v51 = vld [vmem:[#allocation8 + $0x388] sm:$0xff] }
 0x15d   :  { %3628 = vmatpush2.bf16.msra.mxu0 %v4638_v7  ;;  %3671 = vmatpush2.bf16.msra.mxu1 %v4766_v59  ;;  %v406_v7 = vld [vmem:[#allocation8 + $0x48] sm:$0xff] }
 0x15e   :  { %3683 = vmatprep.subr.bf16.mxu0 %v4377_v16  ;;  %3726 = vmatprep.subr.bf16.mxu1 %v4505_v2  ;;  %v538_v59 = vld [vmem:[#allocation8 + $0x468] sm:$0xff]  ;;  %v4336_v16 = vcombine.low %v414_v63, %v418_v0  ;;  %v4329_v12 = vcombine.high %v406_v7, %v410_v8  ;;  %v4328_v23 = vcombine.low %v406_v7, %v410_v8 }
 0x15f   :  { %v4457_v2 = vcombine.high %v534_v9, %v538_v59  ;;  %v514_v20 = vld [vmem:[#allocation8 + $0x3a8] sm:$0xff] }
 0x160   :  { %3630 = vmatmul.mubr.bf16.vlgmr.msra.gmra.mxu0 %v5138_v27  ;;  %3673 = vmatmul.mubr.bf16.vlgmr.msra.gmra.mxu1 %v5140_v36  ;;  %v638_v21 = vld [vmem:[#allocation8 + $0x788] sm:$0xff] }
 0x161   :  { %3684 = vmatpush1.bf16.msra.mxu0 %v4376_v17  ;;  %3715 = vmatprep.mubr.bf16.mxu0 %v5096_v10  ;;  %v526_v17 = vld [vmem:[#allocation8 + $0x408] sm:$0xff] }
 0x162   :  { %3727 = vmatpush1.bf16.msra.mxu1 %v4504_v35  ;;  %3758 = vmatprep.mubr.bf16.mxu1 %v5100_v14  ;;  %v4456_v35 = vcombine.low %v534_v9, %v538_v59  ;;  %v4449_v38 = vcombine.high %v526_v17, %v530_v19  ;;  %v642_v25 = vld [vmem:[#allocation8 + $0x7a8] sm:$0xff] }
 0x163   :  { %3685 = vmatprep.subr.bf16.mxu0 %v4369_v37  ;;  %3728 = vmatprep.subr.bf16.mxu1 %v4497_v40  ;;  %v4321_v37 = vcombine.high %v398_v15, %v402_v28  ;;  %v522_v40 = vld [vmem:[#allocation8 + $0x3e8] sm:$0xff] }
 0x164   :  { %v506_v55 = vld [vmem:[#allocation8 + $0x368] sm:$0xff] }
 0x165   :  { %3686 = vmatpush1.bf16.msra.mxu0 %v4368_v46  ;;  %v4320_v46 = vcombine.low %v398_v15, %v402_v28  ;;  %v630_v56 = vld [vmem:[#allocation8 + $0x748] sm:$0xff] }
 0x166   :  { %3729 = vmatpush1.bf16.msra.mxu1 %v4496_v48  ;;  %3687 = vmatprep.subr.bf16.mxu0 %v4361_v49  ;;  %v4448_v48 = vcombine.low %v526_v17, %v530_v19  ;;  %v4441_v49 = vcombine.high %v518_v39, %v522_v40  ;;  %v634_v57 = vld [vmem:[#allocation8 + $0x768] sm:$0xff] }
 0x167   :  { %3730 = vmatprep.subr.bf16.mxu1 %v4489_v50  ;;  %v4569_v50 = vcombine.high %v646_v41, %v650_v44  ;;  %v494_v63 = vld [vmem:[#allocation8 + $0x308] sm:$0xff] }
 0x168   :  { %v498_v0 = vld [vmem:[#allocation8 + $0x328] sm:$0xff] }
 0x169   :  { %3688 = vmatpush1.bf16.msra.mxu0 %v4360_v52  ;;  %v4440_v52 = vcombine.low %v518_v39, %v522_v40  ;;  %v622_v33 = vld [vmem:[#allocation8 + $0x708] sm:$0xff] }
 0x16a   :  { %3731 = vmatpush1.bf16.msra.mxu1 %v4488_v22  ;;  %3689 = vmatprep.subr.bf16.mxu0 %v4353_v24  ;;  %v4568_v22 = vcombine.low %v646_v41, %v650_v44  ;;  %v4433_v24 = vcombine.high %v510_v51, %v514_v20  ;;  %v626_v1 = vld [vmem:[#allocation8 + $0x728] sm:$0xff] }
 0x16b   :  { %3732 = vmatprep.subr.bf16.mxu1 %v4481_v29  ;;  %v4561_v29 = vcombine.high %v638_v21, %v642_v25  ;;  %v486_v7 = vld [vmem:[#allocation8 + $0x2c8] sm:$0xff] }
 0x16c   :  { %v490_v8 = vld [vmem:[#allocation8 + $0x2e8] sm:$0xff] }
 0x16d   :  { %3690 = vmatpush1.bf16.msra.mxu0 %v4352_v58  ;;  %v4432_v58 = vcombine.low %v510_v51, %v514_v20  ;;  %v614_v9 = vld [vmem:[#allocation8 + $0x6c8] sm:$0xff] }
 0x16e   :  { %3733 = vmatpush1.bf16.msra.mxu1 %v4480_v60  ;;  %3691 = vmatprep.subr.bf16.mxu0 %v4345_v61  ;;  %v4560_v60 = vcombine.low %v638_v21, %v642_v25  ;;  %v4425_v61 = vcombine.high %v502_v54, %v506_v55  ;;  %v618_v59 = vld [vmem:[#allocation8 + $0x6e8] sm:$0xff] }
 0x16f   :  { %3734 = vmatprep.subr.bf16.mxu1 %v4473_v62  ;;  %v4553_v62 = vcombine.high %v630_v56, %v634_v57  ;;  %v478_v15 = vld [vmem:[#allocation8 + $0x288] sm:$0xff] }
 0x170   :  { %v482_v28 = vld [vmem:[#allocation8 + $0x2a8] sm:$0xff] }
 0x171   :  { %3692 = vmatpush1.bf16.msra.mxu0 %v4344_v3  ;;  %v4424_v3 = vcombine.low %v502_v54, %v506_v55  ;;  %v606_v17 = vld [vmem:[#allocation8 + $0x688] sm:$0xff] }
 0x172   :  { %3735 = vmatpush1.bf16.msra.mxu1 %v4472_v4  ;;  %3693 = vmatprep.subr.bf16.mxu0 %v4337_v5  ;;  %v4552_v4 = vcombine.low %v630_v56, %v634_v57  ;;  %v4417_v5 = vcombine.high %v494_v63, %v498_v0  ;;  %v610_v19 = vld [vmem:[#allocation8 + $0x6a8] sm:$0xff] }
 0x173   :  { %3736 = vmatprep.subr.bf16.mxu1 %v4465_v6  ;;  %v4545_v6 = vcombine.high %v622_v33, %v626_v1  ;;  %v470_v39 = vld [vmem:[#allocation8 + $0x248] sm:$0xff] }
 0x174   :  { %v474_v40 = vld [vmem:[#allocation8 + $0x268] sm:$0xff] }
 0x175   :  { %3694 = vmatpush1.bf16.msra.mxu0 %v4336_v16  ;;  %v4416_v16 = vcombine.low %v494_v63, %v498_v0  ;;  %v598_v41 = vld [vmem:[#allocation8 + $0x648] sm:$0xff] }
 0x176   :  { %3737 = vmatpush1.bf16.msra.mxu1 %v4464_v11  ;;  %3695 = vmatprep.subr.bf16.mxu0 %v4329_v12  ;;  %v4544_v11 = vcombine.low %v622_v33, %v626_v1  ;;  %v4409_v12 = vcombine.high %v486_v7, %v490_v8  ;;  %v602_v44 = vld [vmem:[#allocation8 + $0x668] sm:$0xff] }
 0x177   :  { %3738 = vmatprep.subr.bf16.mxu1 %v4457_v2  ;;  %v4537_v2 = vcombine.high %v614_v9, %v618_v59  ;;  %v462_v51 = vld [vmem:[#allocation8 + $0x208] sm:$0xff] }
 0x178   :  { %v466_v20 = vld [vmem:[#allocation8 + $0x228] sm:$0xff] }
 0x179   :  { %3696 = vmatpush1.bf16.msra.mxu0 %v4328_v23  ;;  %v4408_v23 = vcombine.low %v486_v7, %v490_v8  ;;  %v590_v21 = vld [vmem:[#allocation8 + $0x608] sm:$0xff] }
 0x17a   :  { %3739 = vmatpush1.bf16.msra.mxu1 %v4456_v35  ;;  %3697 = vmatprep.subr.bf16.mxu0 %v4321_v37  ;;  %v4536_v35 = vcombine.low %v614_v9, %v618_v59  ;;  %v4401_v37 = vcombine.high %v478_v15, %v482_v28  ;;  %v594_v25 = vld [vmem:[#allocation8 + $0x628] sm:$0xff] }
 0x17b   :  { %3740 = vmatprep.subr.bf16.mxu1 %v4449_v38  ;;  %v4529_v38 = vcombine.high %v606_v17, %v610_v19  ;;  %v710_v54 = vld [vmem:[#allocation8 + $0x9c8] sm:$0xff] }
 0x17c   :  { %v714_v55 = vld [vmem:[#allocation8 + $0x9e8] sm:$0xff] }
 0x17d   :  { %3698 = vmatpush1.bf16.msra.mxu0 %v4320_v46  ;;  %v4400_v46 = vcombine.low %v478_v15, %v482_v28  ;;  %v838_v56 = vld [vmem:[#allocation8 + $0xdc8] sm:$0xff]  ;;  %v4632_v33 = vcombine.low %v710_v54, %v714_v55 }
 0x17e   :  { %3741 = vmatpush1.bf16.msra.mxu1 %v4448_v48  ;;  %3699 = vmatprep.subr.bf16.mxu0 %v4441_v49  ;;  %v4528_v48 = vcombine.low %v606_v17, %v610_v19  ;;  %v4393_v49 = vcombine.high %v470_v39, %v474_v40  ;;  %v842_v57 = vld [vmem:[#allocation8 + $0xde8] sm:$0xff] }
 0x17f   :  { %3742 = vmatprep.subr.bf16.mxu1 %v4569_v50  ;;  %v4521_v50 = vcombine.high %v598_v41, %v602_v44  ;;  %v702_v63 = vld [vmem:[#allocation8 + $0x988] sm:$0xff] }
 0x180   :  { %v706_v0 = vld [vmem:[#allocation8 + $0x9a8] sm:$0xff] }
 0x181   :  { %3700 = vmatpush2.bf16.msra.mxu0 %v4440_v52  ;;  %v4392_v52 = vcombine.low %v470_v39, %v474_v40  ;;  %v830_v1 = vld [vmem:[#allocation8 + $0xd88] sm:$0xff] }
 0x182   :  { %3743 = vmatpush2.bf16.msra.mxu1 %v4568_v22  ;;  %3701 = vmatprep.subr.bf16.mxu0 %v4433_v24  ;;  %v4520_v22 = vcombine.low %v598_v41, %v602_v44  ;;  %v4385_v24 = vcombine.high %v462_v51, %v466_v20  ;;  %v698_v7 = vld [vmem:[#allocation8 + $0x968] sm:$0xff] }
 0x183   :  { %3744 = vmatprep.subr.bf16.mxu1 %v4561_v29  ;;  %v4513_v29 = vcombine.high %v590_v21, %v594_v25  ;;  %v822_v9 = vld [vmem:[#allocation8 + $0xd48] sm:$0xff] }
 0x184   :  { %v826_v59 = vld [vmem:[#allocation8 + $0xd68] sm:$0xff] }
 0x185   :  { %3702 = vmatpush2.bf16.msra.mxu0 %v4432_v58  ;;  %v4384_v58 = vcombine.low %v462_v51, %v466_v20  ;;  %v686_v15 = vld [vmem:[#allocation8 + $0x908] sm:$0xff] }
 0x186   :  { %3745 = vmatpush2.bf16.msra.mxu1 %v4560_v60  ;;  %3703 = vmatprep.subr.bf16.mxu0 %v4425_v61  ;;  %v4512_v60 = vcombine.low %v590_v21, %v594_v25  ;;  %v4633_v61 = vcombine.high %v710_v54, %v714_v55  ;;  %v690_v28 = vld [vmem:[#allocation8 + $0x928] sm:$0xff] }
 0x187   :  { %3746 = vmatprep.subr.bf16.mxu1 %v4553_v62  ;;  %v4761_v62 = vcombine.high %v838_v56, %v842_v57  ;;  %v814_v17 = vld [vmem:[#allocation8 + $0xd08] sm:$0xff] }
 0x188   :  { %v818_v19 = vld [vmem:[#allocation8 + $0xd28] sm:$0xff] }
 0x189   :  { %3704 = vmatpush2.bf16.msra.mxu0 %v4424_v3  ;;  %v834_v3 = vld [vmem:[#allocation8 + $0xda8] sm:$0xff] }
 0x18a   :  { %3747 = vmatpush2.bf16.msra.mxu1 %v4552_v4  ;;  %3705 = vmatprep.subr.bf16.mxu0 %v4417_v5  ;;  %v4760_v4 = vcombine.low %v838_v56, %v842_v57  ;;  %v4625_v5 = vcombine.high %v702_v63, %v706_v0  ;;  %v4753_v8 = vcombine.high %v830_v1, %v834_v3  ;;  %v678_v39 = vld [vmem:[#allocation8 + $0x8c8] sm:$0xff] }
 0x18b   :  { %3748 = vmatprep.subr.bf16.mxu1 %v4545_v6  ;;  %v694_v6 = vld [vmem:[#allocation8 + $0x948] sm:$0xff] }
 0x18c   :  { %v682_v40 = vld [vmem:[#allocation8 + $0x8e8] sm:$0xff] }
 0x18d   :  { %3706 = vmatpush2.bf16.msra.mxu0 %v4416_v16  ;;  %v4624_v16 = vcombine.low %v702_v63, %v706_v0  ;;  %v806_v41 = vld [vmem:[#allocation8 + $0xcc8] sm:$0xff] }
 0x18e   :  { %3749 = vmatpush2.bf16.msra.mxu1 %v4544_v11  ;;  %3707 = vmatprep.subr.bf16.mxu0 %v4409_v12  ;;  %v4752_v11 = vcombine.low %v830_v1, %v834_v3  ;;  %v4617_v12 = vcombine.high %v694_v6, %v698_v7  ;;  %v810_v44 = vld [vmem:[#allocation8 + $0xce8] sm:$0xff] }
 0x18f   :  { %3750 = vmatprep.subr.bf16.mxu1 %v4537_v2  ;;  %v4745_v2 = vcombine.high %v822_v9, %v826_v59  ;;  %v670_v51 = vld [vmem:[#allocation8 + $0x888] sm:$0xff] }
 0x190   :  { %v674_v20 = vld [vmem:[#allocation8 + $0x8a8] sm:$0xff] }
 0x191   :  { %3708 = vmatpush2.bf16.msra.mxu0 %v4408_v23  ;;  %v4616_v23 = vcombine.low %v694_v6, %v698_v7  ;;  %v798_v21 = vld [vmem:[#allocation8 + $0xc88] sm:$0xff] }
 0x192   :  { %3751 = vmatpush2.bf16.msra.mxu1 %v4536_v35  ;;  %3709 = vmatprep.subr.bf16.mxu0 %v4401_v37  ;;  %v4744_v35 = vcombine.low %v822_v9, %v826_v59  ;;  %v4609_v37 = vcombine.high %v686_v15, %v690_v28  ;;  %v802_v25 = vld [vmem:[#allocation8 + $0xca8] sm:$0xff] }
 0x193   :  { %3752 = vmatprep.subr.bf16.mxu1 %v4529_v38  ;;  %v4737_v38 = vcombine.high %v814_v17, %v818_v19  ;;  %v662_v54 = vld [vmem:[#allocation8 + $0x848] sm:$0xff] }
 0x194   :  { %v666_v55 = vld [vmem:[#allocation8 + $0x868] sm:$0xff] }
 0x195   :  { %3710 = vmatpush2.bf16.msra.mxu0 %v4400_v46  ;;  %v4608_v46 = vcombine.low %v686_v15, %v690_v28  ;;  %v790_v56 = vld [vmem:[#allocation8 + $0xc48] sm:$0xff]  ;;  %v4584_v3 = vcombine.low %v662_v54, %v666_v55 }
 0x196   :  { %3753 = vmatpush2.bf16.msra.mxu1 %v4528_v48  ;;  %3711 = vmatprep.subr.bf16.mxu0 %v4393_v49  ;;  %v4736_v48 = vcombine.low %v814_v17, %v818_v19  ;;  %v4601_v49 = vcombine.high %v678_v39, %v682_v40  ;;  %v794_v57 = vld [vmem:[#allocation8 + $0xc68] sm:$0xff] }
 0x197   :  { %3754 = vmatprep.subr.bf16.mxu1 %v4521_v50  ;;  %v4729_v50 = vcombine.high %v806_v41, %v810_v44  ;;  %v654_v63 = vld [vmem:[#allocation8 + $0x808] sm:$0xff] }
 0x198   :  { %v658_v0 = vld [vmem:[#allocation8 + $0x828] sm:$0xff] }
 0x199   :  { %3712 = vmatpush2.bf16.msra.mxu0 %v4392_v52  ;;  %v4600_v52 = vcombine.low %v678_v39, %v682_v40  ;;  %v786_v1 = vld [vmem:[#allocation8 + $0xc28] sm:$0xff] }
 0x19a   :  { %3755 = vmatpush2.bf16.msra.mxu1 %v4520_v22  ;;  %3713 = vmatprep.subr.bf16.mxu0 %v4385_v24  ;;  %v4728_v22 = vcombine.low %v806_v41, %v810_v44  ;;  %v4593_v24 = vcombine.high %v670_v51, %v674_v20  ;;  %v774_v7 = vld [vmem:[#allocation8 + $0xbc8] sm:$0xff] }
 0x19b   :  { %3756 = vmatprep.subr.bf16.mxu1 %v4513_v29  ;;  %v4721_v29 = vcombine.high %v798_v21, %v802_v25  ;;  %v902_v9 = vld [vmem:[#allocation8 + $0xfc8] sm:$0xff] }
 0x19c   :  { %v906_v59 = vld [vmem:[#allocation8 + $0xfe8] sm:$0xff] }
 0x19d   :  { %3714 = vmatpush2.bf16.msra.mxu0 %v4384_v58  ;;  %v4592_v58 = vcombine.low %v670_v51, %v674_v20  ;;  %v766_v15 = vld [vmem:[#allocation8 + $0xb88] sm:$0xff] }
 0x19e   :  { %3757 = vmatpush2.bf16.msra.mxu1 %v4512_v60  ;;  %3769 = vmatprep.subr.bf16.mxu0 %v4633_v61  ;;  %v4720_v60 = vcombine.low %v798_v21, %v802_v25  ;;  %v4585_v61 = vcombine.high %v662_v54, %v666_v55  ;;  %v770_v28 = vld [vmem:[#allocation8 + $0xba8] sm:$0xff] }
 0x19f   :  { %3812 = vmatprep.subr.bf16.mxu1 %v4761_v62  ;;  %v4713_v62 = vcombine.high %v790_v56, %v794_v57  ;;  %v894_v17 = vld [vmem:[#allocation8 + $0xf88] sm:$0xff] }
 0x1a0   :  { %3716 = vmatmul.mubr.bf16.vlgmr.msra.gmra.mxu0 %v5098_v13  ;;  %v898_v19 = vld [vmem:[#allocation8 + $0xfa8] sm:$0xff] }
 0x1a1   :  { %3759 = vmatmul.mubr.bf16.vlgmr.msra.gmra.mxu1 %v5104_v18  ;;  %3770 = vmatpush1.bf16.msra.mxu0 %v4632_v33  ;;  %v782_v33 = vld [vmem:[#allocation8 + $0xc08] sm:$0xff] }
 0x1a2   :  { %3801 = vmatprep.mubr.bf16.mxu0 %v5118_v53  ;;  %3813 = vmatpush1.bf16.msra.mxu1 %v4760_v4  ;;  %v4712_v4 = vcombine.low %v790_v56, %v794_v57  ;;  %v4705_v6 = vcombine.high %v782_v33, %v786_v1  ;;  %v758_v39 = vld [vmem:[#allocation8 + $0xb48] sm:$0xff] }
 0x1a3   :  { %3844 = vmatprep.mubr.bf16.mxu1 %v5120_v26  ;;  %3771 = vmatprep.subr.bf16.mxu0 %v4625_v5  ;;  %v4577_v5 = vcombine.high %v654_v63, %v658_v0  ;;  %v762_v40 = vld [vmem:[#allocation8 + $0xb68] sm:$0xff] }
 0x1a4   :  { %3814 = vmatprep.subr.bf16.mxu1 %v4753_v8  ;;  %v778_v8 = vld [vmem:[#allocation8 + $0xbe8] sm:$0xff] }
 0x1a5   :  { %3772 = vmatpush1.bf16.msra.mxu0 %v4624_v16  ;;  %v4576_v16 = vcombine.low %v654_v63, %v658_v0  ;;  %v886_v41 = vld [vmem:[#allocation8 + $0xf48] sm:$0xff] }
 0x1a6   :  { %3815 = vmatpush1.bf16.msra.mxu1 %v4752_v11  ;;  %3773 = vmatprep.subr.bf16.mxu0 %v4617_v12  ;;  %v4704_v11 = vcombine.low %v782_v33, %v786_v1  ;;  %v4697_v12 = vcombine.high %v774_v7, %v778_v8  ;;  %v890_v44 = vld [vmem:[#allocation8 + $0xf68] sm:$0xff] }
 0x1a7   :  { %3816 = vmatprep.subr.bf16.mxu1 %v4745_v2  ;;  %v4825_v2 = vcombine.high %v902_v9, %v906_v59  ;;  %v750_v51 = vld [vmem:[#allocation8 + $0xb08] sm:$0xff] }
 0x1a8   :  { %v754_v20 = vld [vmem:[#allocation8 + $0xb28] sm:$0xff] }
 0x1a9   :  { %3774 = vmatpush1.bf16.msra.mxu0 %v4616_v23  ;;  %v4696_v23 = vcombine.low %v774_v7, %v778_v8  ;;  %v878_v21 = vld [vmem:[#allocation8 + $0xf08] sm:$0xff] }
 0x1aa   :  { %3817 = vmatpush1.bf16.msra.mxu1 %v4744_v35  ;;  %3775 = vmatprep.subr.bf16.mxu0 %v4609_v37  ;;  %v4824_v35 = vcombine.low %v902_v9, %v906_v59  ;;  %v4689_v37 = vcombine.high %v766_v15, %v770_v28  ;;  %v882_v25 = vld [vmem:[#allocation8 + $0xf28] sm:$0xff] }
 0x1ab   :  { %3818 = vmatprep.subr.bf16.mxu1 %v4737_v38  ;;  %v4817_v38 = vcombine.high %v894_v17, %v898_v19  ;;  %v742_v54 = vld [vmem:[#allocation8 + $0xac8] sm:$0xff] }
 0x1ac   :  { %v746_v55 = vld [vmem:[#allocation8 + $0xae8] sm:$0xff] }
 0x1ad   :  { %3776 = vmatpush1.bf16.msra.mxu0 %v4608_v46  ;;  %v4688_v46 = vcombine.low %v766_v15, %v770_v28  ;;  %v870_v56 = vld [vmem:[#allocation8 + $0xec8] sm:$0xff] }
 0x1ae   :  { %3819 = vmatpush1.bf16.msra.mxu1 %v4736_v48  ;;  %3777 = vmatprep.subr.bf16.mxu0 %v4601_v49  ;;  %v4816_v48 = vcombine.low %v894_v17, %v898_v19  ;;  %v4681_v49 = vcombine.high %v758_v39, %v762_v40  ;;  %v874_v57 = vld [vmem:[#allocation8 + $0xee8] sm:$0xff] }
 0x1af   :  { %3820 = vmatprep.subr.bf16.mxu1 %v4729_v50  ;;  %v4809_v50 = vcombine.high %v886_v41, %v890_v44  ;;  %v734_v63 = vld [vmem:[#allocation8 + $0xa88] sm:$0xff] }
 0x1b0   :  { %v738_v0 = vld [vmem:[#allocation8 + $0xaa8] sm:$0xff] }
 0x1b1   :  { %3778 = vmatpush1.bf16.msra.mxu0 %v4600_v52  ;;  %v4680_v52 = vcombine.low %v758_v39, %v762_v40  ;;  %v862_v33 = vld [vmem:[#allocation8 + $0xe88] sm:$0xff]  ;;  %v455_v39 = vld [vmem:[#allocation8 + $0x1d0] sm:$0xff] }
 0x1b2   :  { %3821 = vmatpush1.bf16.msra.mxu1 %v4728_v22  ;;  %3779 = vmatprep.subr.bf16.mxu0 %v4593_v24  ;;  %v4808_v22 = vcombine.low %v886_v41, %v890_v44  ;;  %v4673_v24 = vcombine.high %v750_v51, %v754_v20  ;;  %v866_v1 = vld [vmem:[#allocation8 + $0xea8] sm:$0xff]  ;;  %v459_v40 = vld [vmem:[#allocation8 + $0x1f0] sm:$0xff] }
 0x1b3   :  { %3822 = vmatprep.subr.bf16.mxu1 %v4721_v29  ;;  %v4801_v29 = vcombine.high %v878_v21, %v882_v25  ;;  %v726_v7 = vld [vmem:[#allocation8 + $0xa48] sm:$0xff]  ;;  %v583_v41 = vld [vmem:[#allocation8 + $0x5d0] sm:$0xff] }
 0x1b4   :  { %v730_v8 = vld [vmem:[#allocation8 + $0xa68] sm:$0xff]  ;;  %v587_v44 = vld [vmem:[#allocation8 + $0x5f0] sm:$0xff] }
 0x1b5   :  { %3780 = vmatpush1.bf16.msra.mxu0 %v4592_v58  ;;  %v4672_v58 = vcombine.low %v750_v51, %v754_v20  ;;  %v854_v9 = vld [vmem:[#allocation8 + $0xe48] sm:$0xff]  ;;  %v447_v51 = vld [vmem:[#allocation8 + $0x190] sm:$0xff] }
 0x1b6   :  { %3823 = vmatpush1.bf16.msra.mxu1 %v4720_v60  ;;  %3781 = vmatprep.subr.bf16.mxu0 %v4585_v61  ;;  %v4800_v60 = vcombine.low %v878_v21, %v882_v25  ;;  %v4665_v61 = vcombine.high %v742_v54, %v746_v55  ;;  %v858_v59 = vld [vmem:[#allocation8 + $0xe68] sm:$0xff]  ;;  %v451_v20 = vld [vmem:[#allocation8 + $0x1b0] sm:$0xff]  ;;  %v4378_v21 = vcombine.low %v455_v39, %v459_v40 }
 0x1b7   :  { %3824 = vmatprep.subr.bf16.mxu1 %v4713_v62  ;;  %v4793_v62 = vcombine.high %v870_v56, %v874_v57  ;;  %v718_v15 = vld [vmem:[#allocation8 + $0xa08] sm:$0xff]  ;;  %v575_v25 = vld [vmem:[#allocation8 + $0x590] sm:$0xff] }
 0x1b8   :  { %v722_v28 = vld [vmem:[#allocation8 + $0xa28] sm:$0xff] }
 0x1b9   :  { %3782 = vmatpush1.bf16.msra.mxu0 %v4584_v3  ;;  %v4664_v3 = vcombine.low %v742_v54, %v746_v55  ;;  %v846_v17 = vld [vmem:[#allocation8 + $0xe08] sm:$0xff]  ;;  %v443_v54 = vld [vmem:[#allocation8 + $0x170] sm:$0xff] }
 0x1ba   :  { %3825 = vmatpush1.bf16.msra.mxu1 %v4712_v4  ;;  %3783 = vmatprep.subr.bf16.mxu0 %v4577_v5  ;;  %v4792_v4 = vcombine.low %v870_v56, %v874_v57  ;;  %v4657_v5 = vcombine.high %v734_v63, %v738_v0  ;;  %v850_v19 = vld [vmem:[#allocation8 + $0xe28] sm:$0xff]  ;;  %v567_v56 = vld [vmem:[#allocation8 + $0x550] sm:$0xff] }
 0x1bb   :  { %3826 = vmatprep.subr.bf16.mxu1 %v4705_v6  ;;  %v4785_v6 = vcombine.high %v862_v33, %v866_v1  ;;  %v571_v57 = vld [vmem:[#allocation8 + $0x570] sm:$0xff] }
 0x1bd   :  { %3784 = vmatpush1.bf16.msra.mxu0 %v4576_v16  ;;  %v4656_v16 = vcombine.low %v734_v63, %v738_v0  ;;  %v431_v63 = vld [vmem:[#allocation8 + $0x110] sm:$0xff] }
 0x1be   :  { %3827 = vmatpush1.bf16.msra.mxu1 %v4704_v11  ;;  %3785 = vmatprep.subr.bf16.mxu0 %v4697_v12  ;;  %v4784_v11 = vcombine.low %v862_v33, %v866_v1  ;;  %v4649_v12 = vcombine.high %v726_v7, %v730_v8  ;;  %v435_v0 = vld [vmem:[#allocation8 + $0x130] sm:$0xff] }
 0x1bf   :  { %3828 = vmatprep.subr.bf16.mxu1 %v4825_v2  ;;  %v4777_v2 = vcombine.high %v854_v9, %v858_v59  ;;  %v559_v33 = vld [vmem:[#allocation8 + $0x510] sm:$0xff] }
 0x1c0   :  { %v563_v1 = vld [vmem:[#allocation8 + $0x530] sm:$0xff] }
 0x1c1   :  { %3786 = vmatpush2.bf16.msra.mxu0 %v4696_v23  ;;  %v4648_v23 = vcombine.low %v726_v7, %v730_v8  ;;  %v423_v7 = vld [vmem:[#allocation8 + $0xd0] sm:$0xff] }
 0x1c2   :  { %3829 = vmatpush2.bf16.msra.mxu1 %v4824_v35  ;;  %3787 = vmatprep.subr.bf16.mxu0 %v4689_v37  ;;  %v4776_v35 = vcombine.low %v854_v9, %v858_v59  ;;  %v4641_v37 = vcombine.high %v718_v15, %v722_v28  ;;  %v427_v8 = vld [vmem:[#allocation8 + $0xf0] sm:$0xff] }
 0x1c3   :  { %3830 = vmatprep.subr.bf16.mxu1 %v4817_v38  ;;  %v4769_v38 = vcombine.high %v846_v17, %v850_v19  ;;  %v551_v9 = vld [vmem:[#allocation8 + $0x4d0] sm:$0xff] }
 0x1c4   :  { %v555_v59 = vld [vmem:[#allocation8 + $0x4f0] sm:$0xff] }
 0x1c5   :  { %3788 = vmatpush2.bf16.msra.mxu0 %v4688_v46  ;;  %v4640_v46 = vcombine.low %v718_v15, %v722_v28  ;;  %v415_v15 = vld [vmem:[#allocation8 + $0x90] sm:$0xff] }
 0x1c6   :  { %3831 = vmatpush2.bf16.msra.mxu1 %v4816_v48  ;;  %3789 = vmatprep.subr.bf16.mxu0 %v4681_v49  ;;  %v4768_v48 = vcombine.low %v846_v17, %v850_v19  ;;  %v4379_v49 = vcombine.high %v455_v39, %v459_v40  ;;  %v419_v28 = vld [vmem:[#allocation8 + $0xb0] sm:$0xff] }
 0x1c7   :  { %3832 = vmatprep.subr.bf16.mxu1 %v4809_v50  ;;  %v4507_v50 = vcombine.high %v583_v41, %v587_v44  ;;  %v543_v17 = vld [vmem:[#allocation8 + $0x490] sm:$0xff] }
 0x1c8   :  { %v547_v19 = vld [vmem:[#allocation8 + $0x4b0] sm:$0xff] }
 0x1c9   :  { %3790 = vmatpush2.bf16.msra.mxu0 %v4680_v52  ;;  %v579_v52 = vld [vmem:[#allocation8 + $0x5b0] sm:$0xff] }
 0x1ca   :  { %3833 = vmatpush2.bf16.msra.mxu1 %v4808_v22  ;;  %3791 = vmatprep.subr.bf16.mxu0 %v4673_v24  ;;  %v4506_v22 = vcombine.low %v583_v41, %v587_v44  ;;  %v4371_v24 = vcombine.high %v447_v51, %v451_v20  ;;  %v4499_v55 = vcombine.high %v575_v25, %v579_v52  ;;  %v407_v39 = vld [vmem:[#allocation8 + $0x50] sm:$0xff] }
 0x1cb   :  { %3834 = vmatprep.subr.bf16.mxu1 %v4801_v29  ;;  %v439_v29 = vld [vmem:[#allocation8 + $0x150] sm:$0xff] }
 0x1cc   :  { %v411_v40 = vld [vmem:[#allocation8 + $0x70] sm:$0xff] }
 0x1cd   :  { %3792 = vmatpush2.bf16.msra.mxu0 %v4672_v58  ;;  %v4370_v58 = vcombine.low %v447_v51, %v451_v20  ;;  %v535_v41 = vld [vmem:[#allocation8 + $0x450] sm:$0xff] }
 0x1ce   :  { %3835 = vmatpush2.bf16.msra.mxu1 %v4800_v60  ;;  %3793 = vmatprep.subr.bf16.mxu0 %v4665_v61  ;;  %v4498_v60 = vcombine.low %v575_v25, %v579_v52  ;;  %v4363_v61 = vcombine.high %v439_v29, %v443_v54  ;;  %v539_v44 = vld [vmem:[#allocation8 + $0x470] sm:$0xff]  ;;  %v4330_v52 = vcombine.low %v407_v39, %v411_v40 }
 0x1cf   :  { %3836 = vmatprep.subr.bf16.mxu1 %v4793_v62  ;;  %v4491_v62 = vcombine.high %v567_v56, %v571_v57  ;;  %v399_v51 = vld [vmem:[#allocation8 + $0x10] sm:$0xff] }
 0x1d0   :  { %v403_v20 = vld [vmem:[#allocation8 + $0x30] sm:$0xff] }
 0x1d1   :  { %3794 = vmatpush2.bf16.msra.mxu0 %v4664_v3  ;;  %v4362_v3 = vcombine.low %v439_v29, %v443_v54  ;;  %v531_v25 = vld [vmem:[#allocation8 + $0x430] sm:$0xff] }
 0x1d2   :  { %3837 = vmatpush2.bf16.msra.mxu1 %v4792_v4  ;;  %3795 = vmatprep.subr.bf16.mxu0 %v4657_v5  ;;  %v4490_v4 = vcombine.low %v567_v56, %v571_v57  ;;  %v4355_v5 = vcombine.high %v431_v63, %v435_v0  ;;  %v519_v54 = vld [vmem:[#allocation8 + $0x3d0] sm:$0xff] }
 0x1d3   :  { %3838 = vmatprep.subr.bf16.mxu1 %v4785_v6  ;;  %v4483_v6 = vcombine.high %v559_v33, %v563_v1  ;;  %v647_v56 = vld [vmem:[#allocation8 + $0x7d0] sm:$0xff] }
 0x1d4   :  { %v651_v57 = vld [vmem:[#allocation8 + $0x7f0] sm:$0xff] }
 0x1d5   :  { %3796 = vmatpush2.bf16.msra.mxu0 %v4656_v16  ;;  %v4354_v16 = vcombine.low %v431_v63, %v435_v0  ;;  %v511_v63 = vld [vmem:[#allocation8 + $0x390] sm:$0xff] }
 0x1d6   :  { %3839 = vmatpush2.bf16.msra.mxu1 %v4784_v11  ;;  %3797 = vmatprep.subr.bf16.mxu0 %v4649_v12  ;;  %v4482_v11 = vcombine.low %v559_v33, %v563_v1  ;;  %v4347_v12 = vcombine.high %v423_v7, %v427_v8  ;;  %v515_v0 = vld [vmem:[#allocation8 + $0x3b0] sm:$0xff] }
 0x1d7   :  { %3840 = vmatprep.subr.bf16.mxu1 %v4777_v2  ;;  %v4475_v2 = vcombine.high %v551_v9, %v555_v59  ;;  %v639_v33 = vld [vmem:[#allocation8 + $0x790] sm:$0xff] }
 0x1d8   :  { %v643_v1 = vld [vmem:[#allocation8 + $0x7b0] sm:$0xff] }
 0x1d9   :  { %3798 = vmatpush2.bf16.msra.mxu0 %v4648_v23  ;;  %v4346_v23 = vcombine.low %v423_v7, %v427_v8  ;;  %v503_v7 = vld [vmem:[#allocation8 + $0x350] sm:$0xff] }
 0x1da   :  { %3841 = vmatpush2.bf16.msra.mxu1 %v4776_v35  ;;  %3799 = vmatprep.subr.bf16.mxu0 %v4641_v37  ;;  %v4474_v35 = vcombine.low %v551_v9, %v555_v59  ;;  %v4339_v37 = vcombine.high %v415_v15, %v419_v28  ;;  %v507_v8 = vld [vmem:[#allocation8 + $0x370] sm:$0xff] }
 0x1db   :  { %3842 = vmatprep.subr.bf16.mxu1 %v4769_v38  ;;  %v4467_v38 = vcombine.high %v543_v17, %v547_v19  ;;  %v631_v9 = vld [vmem:[#allocation8 + $0x750] sm:$0xff] }
 0x1dc   :  { %v635_v59 = vld [vmem:[#allocation8 + $0x770] sm:$0xff] }
 0x1dd   :  { %3800 = vmatpush2.bf16.msra.mxu0 %v4640_v46  ;;  %v4338_v46 = vcombine.low %v415_v15, %v419_v28  ;;  %v495_v15 = vld [vmem:[#allocation8 + $0x310] sm:$0xff] }
 0x1de   :  { %3843 = vmatpush2.bf16.msra.mxu1 %v4768_v48  ;;  %3855 = vmatprep.subr.bf16.mxu0 %v4379_v49  ;;  %v4466_v48 = vcombine.low %v543_v17, %v547_v19  ;;  %v4331_v49 = vcombine.high %v407_v39, %v411_v40  ;;  %v499_v28 = vld [vmem:[#allocation8 + $0x330] sm:$0xff] }
 0x1df   :  { %3898 = vmatprep.subr.bf16.mxu1 %v4507_v50  ;;  %v4459_v50 = vcombine.high %v535_v41, %v539_v44  ;;  %v623_v17 = vld [vmem:[#allocation8 + $0x710] sm:$0xff] }
 0x1e0   :  { %3802 = vmatmul.mubr.bf16.vlgmr.msra.gmra.mxu0 %v5138_v27  ;;  %v627_v19 = vld [vmem:[#allocation8 + $0x730] sm:$0xff] }
 0x1e1   :  { %3845 = vmatmul.mubr.bf16.vlgmr.msra.gmra.mxu1 %v5140_v36  ;;  %3856 = vmatpush1.bf16.msra.mxu0 %v4378_v21  ;;  %v527_v21 = vld [vmem:[#allocation8 + $0x410] sm:$0xff] }
 0x1e2   :  { %3887 = vmatprep.mubr.bf16.mxu0 %v5096_v10  ;;  %3899 = vmatpush1.bf16.msra.mxu1 %v4506_v22  ;;  %v4458_v22 = vcombine.low %v535_v41, %v539_v44  ;;  %v4451_v29 = vcombine.high %v527_v21, %v531_v25  ;;  %v487_v39 = vld [vmem:[#allocation8 + $0x2d0] sm:$0xff] }
 0x1e3   :  { %3930 = vmatprep.mubr.bf16.mxu1 %v5100_v14  ;;  %3857 = vmatprep.subr.bf16.mxu0 %v4371_v24  ;;  %v4323_v24 = vcombine.high %v399_v51, %v403_v20  ;;  %v491_v40 = vld [vmem:[#allocation8 + $0x2f0] sm:$0xff] }
 0x1e4   :  { %3900 = vmatprep.subr.bf16.mxu1 %v4499_v55  ;;  %v523_v55 = vld [vmem:[#allocation8 + $0x3f0] sm:$0xff] }
 0x1e5   :  { %3858 = vmatpush1.bf16.msra.mxu0 %v4370_v58  ;;  %v4322_v58 = vcombine.low %v399_v51, %v403_v20  ;;  %v615_v41 = vld [vmem:[#allocation8 + $0x6d0] sm:$0xff] }
 0x1e6   :  { %3901 = vmatpush1.bf16.msra.mxu1 %v4498_v60  ;;  %3859 = vmatprep.subr.bf16.mxu0 %v4363_v61  ;;  %v4450_v60 = vcombine.low %v527_v21, %v531_v25  ;;  %v4443_v61 = vcombine.high %v519_v54, %v523_v55  ;;  %v619_v44 = vld [vmem:[#allocation8 + $0x6f0] sm:$0xff] }
 0x1e7   :  { %3902 = vmatprep.subr.bf16.mxu1 %v4491_v62  ;;  %v4571_v62 = vcombine.high %v647_v56, %v651_v57  ;;  %v479_v51 = vld [vmem:[#allocation8 + $0x290] sm:$0xff] }
 0x1e8   :  { %v483_v20 = vld [vmem:[#allocation8 + $0x2b0] sm:$0xff] }
 0x1e9   :  { %3860 = vmatpush1.bf16.msra.mxu0 %v4362_v3  ;;  %v4442_v3 = vcombine.low %v519_v54, %v523_v55  ;;  %v607_v21 = vld [vmem:[#allocation8 + $0x690] sm:$0xff] }
 0x1ea   :  { %3903 = vmatpush1.bf16.msra.mxu1 %v4490_v4  ;;  %3861 = vmatprep.subr.bf16.mxu0 %v4355_v5  ;;  %v4570_v4 = vcombine.low %v647_v56, %v651_v57  ;;  %v4435_v5 = vcombine.high %v511_v63, %v515_v0  ;;  %v611_v25 = vld [vmem:[#allocation8 + $0x6b0] sm:$0xff] }
 0x1eb   :  { %3904 = vmatprep.subr.bf16.mxu1 %v4483_v6  ;;  %v4563_v6 = vcombine.high %v639_v33, %v643_v1  ;;  %v471_v54 = vld [vmem:[#allocation8 + $0x250] sm:$0xff] }
 0x1ec   :  { %v475_v55 = vld [vmem:[#allocation8 + $0x270] sm:$0xff] }
 0x1ed   :  { %3862 = vmatpush1.bf16.msra.mxu0 %v4354_v16  ;;  %v4434_v16 = vcombine.low %v511_v63, %v515_v0  ;;  %v599_v56 = vld [vmem:[#allocation8 + $0x650] sm:$0xff] }
 0x1ee   :  { %3905 = vmatpush1.bf16.msra.mxu1 %v4482_v11  ;;  %3863 = vmatprep.subr.bf16.mxu0 %v4347_v12  ;;  %v4562_v11 = vcombine.low %v639_v33, %v643_v1  ;;  %v4427_v12 = vcombine.high %v503_v7, %v507_v8  ;;  %v603_v57 = vld [vmem:[#allocation8 + $0x670] sm:$0xff] }
 0x1ef   :  { %3906 = vmatprep.subr.bf16.mxu1 %v4475_v2  ;;  %v4555_v2 = vcombine.high %v631_v9, %v635_v59  ;;  %v463_v63 = vld [vmem:[#allocation8 + $0x210] sm:$0xff] }
 0x1f0   :  { %v467_v0 = vld [vmem:[#allocation8 + $0x230] sm:$0xff] }
 0x1f1   :  { %3864 = vmatpush1.bf16.msra.mxu0 %v4346_v23  ;;  %v4426_v23 = vcombine.low %v503_v7, %v507_v8  ;;  %v591_v33 = vld [vmem:[#allocation8 + $0x610] sm:$0xff] }
 0x1f2   :  { %3907 = vmatpush1.bf16.msra.mxu1 %v4474_v35  ;;  %3865 = vmatprep.subr.bf16.mxu0 %v4339_v37  ;;  %v4554_v35 = vcombine.low %v631_v9, %v635_v59  ;;  %v4419_v37 = vcombine.high %v495_v15, %v499_v28  ;;  %v595_v1 = vld [vmem:[#allocation8 + $0x630] sm:$0xff] }
 0x1f3   :  { %3908 = vmatprep.subr.bf16.mxu1 %v4467_v38  ;;  %v4547_v38 = vcombine.high %v623_v17, %v627_v19  ;;  %v711_v7 = vld [vmem:[#allocation8 + $0x9d0] sm:$0xff] }
 0x1f4   :  { %v715_v8 = vld [vmem:[#allocation8 + $0x9f0] sm:$0xff] }
 0x1f5   :  { %3866 = vmatpush1.bf16.msra.mxu0 %v4338_v46  ;;  %v4418_v46 = vcombine.low %v495_v15, %v499_v28  ;;  %v839_v9 = vld [vmem:[#allocation8 + $0xdd0] sm:$0xff] }
 0x1f6   :  { %3909 = vmatpush1.bf16.msra.mxu1 %v4466_v48  ;;  %3867 = vmatprep.subr.bf16.mxu0 %v4331_v49  ;;  %v4546_v48 = vcombine.low %v623_v17, %v627_v19  ;;  %v4411_v49 = vcombine.high %v487_v39, %v491_v40  ;;  %v843_v59 = vld [vmem:[#allocation8 + $0xdf0] sm:$0xff]  ;;  %v4634_v17 = vcombine.low %v711_v7, %v715_v8 }
 0x1f7   :  { %3910 = vmatprep.subr.bf16.mxu1 %v4459_v50  ;;  %v4539_v50 = vcombine.high %v615_v41, %v619_v44  ;;  %v703_v15 = vld [vmem:[#allocation8 + $0x990] sm:$0xff] }
 0x1f8   :  { %v707_v28 = vld [vmem:[#allocation8 + $0x9b0] sm:$0xff] }
 0x1f9   :  { %3868 = vmatpush1.bf16.msra.mxu0 %v4330_v52  ;;  %v4410_v52 = vcombine.low %v487_v39, %v491_v40  ;;  %v831_v19 = vld [vmem:[#allocation8 + $0xd90] sm:$0xff] }
 0x1fa   :  { %3911 = vmatpush1.bf16.msra.mxu1 %v4458_v22  ;;  %3869 = vmatprep.subr.bf16.mxu0 %v4323_v24  ;;  %v4538_v22 = vcombine.low %v615_v41, %v619_v44  ;;  %v4403_v24 = vcombine.high %v479_v51, %v483_v20  ;;  %v699_v39 = vld [vmem:[#allocation8 + $0x970] sm:$0xff] }
 0x1fb   :  { %3912 = vmatprep.subr.bf16.mxu1 %v4451_v29  ;;  %v4531_v29 = vcombine.high %v607_v21, %v611_v25  ;;  %v823_v41 = vld [vmem:[#allocation8 + $0xd50] sm:$0xff] }
 0x1fc   :  { %v827_v44 = vld [vmem:[#allocation8 + $0xd70] sm:$0xff] }
 0x1fd   :  { %3870 = vmatpush1.bf16.msra.mxu0 %v4322_v58  ;;  %v4402_v58 = vcombine.low %v479_v51, %v483_v20  ;;  %v687_v51 = vld [vmem:[#allocation8 + $0x910] sm:$0xff] }
 0x1fe   :  { %3913 = vmatpush1.bf16.msra.mxu1 %v4450_v60  ;;  %3871 = vmatprep.subr.bf16.mxu0 %v4443_v61  ;;  %v4530_v60 = vcombine.low %v607_v21, %v611_v25  ;;  %v4395_v61 = vcombine.high %v471_v54, %v475_v55  ;;  %v691_v20 = vld [vmem:[#allocation8 + $0x930] sm:$0xff] }
 0x1ff   :  { %3914 = vmatprep.subr.bf16.mxu1 %v4571_v62  ;;  %v4523_v62 = vcombine.high %v599_v56, %v603_v57  ;;  %v815_v21 = vld [vmem:[#allocation8 + $0xd10] sm:$0xff] }
 0x200   :  { %v819_v25 = vld [vmem:[#allocation8 + $0xd30] sm:$0xff] }
 0x201   :  { %3872 = vmatpush2.bf16.msra.mxu0 %v4442_v3  ;;  %v4394_v3 = vcombine.low %v471_v54, %v475_v55  ;;  %v679_v54 = vld [vmem:[#allocation8 + $0x8d0] sm:$0xff] }
 0x202   :  { %3915 = vmatpush2.bf16.msra.mxu1 %v4570_v4  ;;  %3873 = vmatprep.subr.bf16.mxu0 %v4435_v5  ;;  %v4522_v4 = vcombine.low %v599_v56, %v603_v57  ;;  %v4387_v5 = vcombine.high %v463_v63, %v467_v0  ;;  %v683_v55 = vld [vmem:[#allocation8 + $0x8f0] sm:$0xff] }
 0x203   :  { %3916 = vmatprep.subr.bf16.mxu1 %v4563_v6  ;;  %v4515_v6 = vcombine.high %v591_v33, %v595_v1  ;;  %v807_v56 = vld [vmem:[#allocation8 + $0xcd0] sm:$0xff] }
 0x204   :  { %v811_v57 = vld [vmem:[#allocation8 + $0xcf0] sm:$0xff] }
 0x205   :  { %3874 = vmatpush2.bf16.msra.mxu0 %v4434_v16  ;;  %v4386_v16 = vcombine.low %v463_v63, %v467_v0  ;;  %v671_v63 = vld [vmem:[#allocation8 + $0x890] sm:$0xff] }
 0x206   :  { %3917 = vmatpush2.bf16.msra.mxu1 %v4562_v11  ;;  %3875 = vmatprep.subr.bf16.mxu0 %v4427_v12  ;;  %v4514_v11 = vcombine.low %v591_v33, %v595_v1  ;;  %v4635_v12 = vcombine.high %v711_v7, %v715_v8  ;;  %v675_v0 = vld [vmem:[#allocation8 + $0x8b0] sm:$0xff] }
 0x207   :  { %3918 = vmatprep.subr.bf16.mxu1 %v4555_v2  ;;  %v4763_v2 = vcombine.high %v839_v9, %v843_v59  ;;  %v799_v33 = vld [vmem:[#allocation8 + $0xc90] sm:$0xff] }
 0x208   :  { %v803_v1 = vld [vmem:[#allocation8 + $0xcb0] sm:$0xff] }
 0x209   :  { %3876 = vmatpush2.bf16.msra.mxu0 %v4426_v23  ;;  %v835_v23 = vld [vmem:[#allocation8 + $0xdb0] sm:$0xff] }
 0x20a   :  { %3919 = vmatpush2.bf16.msra.mxu1 %v4554_v35  ;;  %3877 = vmatprep.subr.bf16.mxu0 %v4419_v37  ;;  %v4762_v35 = vcombine.low %v839_v9, %v843_v59  ;;  %v4627_v37 = vcombine.high %v703_v15, %v707_v28  ;;  %v4755_v40 = vcombine.high %v831_v19, %v835_v23  ;;  %v663_v7 = vld [vmem:[#allocation8 + $0x850] sm:$0xff] }
 0x20b   :  { %3920 = vmatprep.subr.bf16.mxu1 %v4547_v38  ;;  %v695_v38 = vld [vmem:[#allocation8 + $0x950] sm:$0xff] }
 0x20c   :  { %v667_v8 = vld [vmem:[#allocation8 + $0x870] sm:$0xff] }
 0x20d   :  { %3878 = vmatpush2.bf16.msra.mxu0 %v4418_v46  ;;  %v4626_v46 = vcombine.low %v703_v15, %v707_v28  ;;  %v791_v9 = vld [vmem:[#allocation8 + $0xc50] sm:$0xff] }
 0x20e   :  { %3921 = vmatpush2.bf16.msra.mxu1 %v4546_v48  ;;  %3879 = vmatprep.subr.bf16.mxu0 %v4411_v49  ;;  %v4754_v48 = vcombine.low %v831_v19, %v835_v23  ;;  %v4619_v49 = vcombine.high %v695_v38, %v699_v39  ;;  %v795_v59 = vld [vmem:[#allocation8 + $0xc70] sm:$0xff]  ;;  %v4586_v23 = vcombine.low %v663_v7, %v667_v8 }
 0x20f   :  { %3922 = vmatprep.subr.bf16.mxu1 %v4539_v50  ;;  %v4747_v50 = vcombine.high %v823_v41, %v827_v44  ;;  %v655_v15 = vld [vmem:[#allocation8 + $0x810] sm:$0xff] }
 0x210   :  { %v659_v28 = vld [vmem:[#allocation8 + $0x830] sm:$0xff] }
 0x211   :  { %3880 = vmatpush2.bf16.msra.mxu0 %v4410_v52  ;;  %v4618_v52 = vcombine.low %v695_v38, %v699_v39  ;;  %v787_v19 = vld [vmem:[#allocation8 + $0xc30] sm:$0xff] }
 0x212   :  { %3923 = vmatpush2.bf16.msra.mxu1 %v4538_v22  ;;  %3881 = vmatprep.subr.bf16.mxu0 %v4403_v24  ;;  %v4746_v22 = vcombine.low %v823_v41, %v827_v44  ;;  %v4611_v24 = vcombine.high %v687_v51, %v691_v20  ;;  %v775_v39 = vld [vmem:[#allocation8 + $0xbd0] sm:$0xff] }
 0x213   :  { %3924 = vmatprep.subr.bf16.mxu1 %v4531_v29  ;;  %v4739_v29 = vcombine.high %v815_v21, %v819_v25  ;;  %v903_v41 = vld [vmem:[#allocation8 + $0xfd0] sm:$0xff] }
 0x214   :  { %v907_v44 = vld [vmem:[#allocation8 + $0xff0] sm:$0xff] }
 0x215   :  { %3882 = vmatpush2.bf16.msra.mxu0 %v4402_v58  ;;  %v4610_v58 = vcombine.low %v687_v51, %v691_v20  ;;  %v767_v51 = vld [vmem:[#allocation8 + $0xb90] sm:$0xff] }
 0x216   :  { %3925 = vmatpush2.bf16.msra.mxu1 %v4530_v60  ;;  %3883 = vmatprep.subr.bf16.mxu0 %v4395_v61  ;;  %v4738_v60 = vcombine.low %v815_v21, %v819_v25  ;;  %v4603_v61 = vcombine.high %v679_v54, %v683_v55  ;;  %v771_v20 = vld [vmem:[#allocation8 + $0xbb0] sm:$0xff] }
 0x217   :  { %3926 = vmatprep.subr.bf16.mxu1 %v4523_v62  ;;  %v4731_v62 = vcombine.high %v807_v56, %v811_v57  ;;  %v895_v21 = vld [vmem:[#allocation8 + $0xf90] sm:$0xff] }
 0x218   :  { %v899_v25 = vld [vmem:[#allocation8 + $0xfb0] sm:$0xff] }
 0x219   :  { %3884 = vmatpush2.bf16.msra.mxu0 %v4394_v3  ;;  %v4602_v3 = vcombine.low %v679_v54, %v683_v55  ;;  %v759_v54 = vld [vmem:[#allocation8 + $0xb50] sm:$0xff] }
 0x21a   :  { %3927 = vmatpush2.bf16.msra.mxu1 %v4522_v4  ;;  %3885 = vmatprep.subr.bf16.mxu0 %v4387_v5  ;;  %v4730_v4 = vcombine.low %v807_v56, %v811_v57  ;;  %v4595_v5 = vcombine.high %v671_v63, %v675_v0  ;;  %v763_v55 = vld [vmem:[#allocation8 + $0xb70] sm:$0xff] }
 0x21b   :  { %3928 = vmatprep.subr.bf16.mxu1 %v4515_v6  ;;  %v4723_v6 = vcombine.high %v799_v33, %v803_v1  ;;  %v887_v56 = vld [vmem:[#allocation8 + $0xf50] sm:$0xff] }
 0x21c   :  { %v891_v57 = vld [vmem:[#allocation8 + $0xf70] sm:$0xff] }
 0x21d   :  { %3886 = vmatpush2.bf16.msra.mxu0 %v4386_v16  ;;  %v4594_v16 = vcombine.low %v671_v63, %v675_v0  ;;  %v751_v63 = vld [vmem:[#allocation8 + $0xb10] sm:$0xff] }
 0x21e   :  { %3929 = vmatpush2.bf16.msra.mxu1 %v4514_v11  ;;  %3941 = vmatprep.subr.bf16.mxu0 %v4635_v12  ;;  %v4722_v11 = vcombine.low %v799_v33, %v803_v1  ;;  %v4587_v12 = vcombine.high %v663_v7, %v667_v8  ;;  %v755_v0 = vld [vmem:[#allocation8 + $0xb30] sm:$0xff] }
 0x21f   :  { %3984 = vmatprep.subr.bf16.mxu1 %v4763_v2  ;;  %v4715_v2 = vcombine.high %v791_v9, %v795_v59  ;;  %v879_v33 = vld [vmem:[#allocation8 + $0xf10] sm:$0xff] }
 0x220   :  { %3888 = vmatmul.mubr.bf16.vlgmr.msra.gmra.mxu0 %v5098_v13  ;;  %v883_v1 = vld [vmem:[#allocation8 + $0xf30] sm:$0xff] }
 0x221   :  { %3931 = vmatmul.mubr.bf16.vlgmr.msra.gmra.mxu1 %v5104_v18  ;;  %3942 = vmatpush1.bf16.msra.mxu0 %v4634_v17  ;;  %v783_v17 = vld [vmem:[#allocation8 + $0xc10] sm:$0xff] }
 0x222   :  { %3973 = vmatprep.mubr.bf16.mxu0 %v5118_v53  ;;  %3985 = vmatpush1.bf16.msra.mxu1 %v4762_v35  ;;  %v4714_v35 = vcombine.low %v791_v9, %v795_v59  ;;  %v4707_v38 = vcombine.high %v783_v17, %v787_v19  ;;  %v743_v7 = vld [vmem:[#allocation8 + $0xad0] sm:$0xff] }
 0x223   :  { %4016 = vmatprep.mubr.bf16.mxu1 %v5120_v26  ;;  %3943 = vmatprep.subr.bf16.mxu0 %v4627_v37  ;;  %v4579_v37 = vcombine.high %v655_v15, %v659_v28  ;;  %v747_v8 = vld [vmem:[#allocation8 + $0xaf0] sm:$0xff] }
 0x224   :  { %3986 = vmatprep.subr.bf16.mxu1 %v4755_v40  ;;  %v779_v40 = vld [vmem:[#allocation8 + $0xbf0] sm:$0xff] }
 0x225   :  { %3944 = vmatpush1.bf16.msra.mxu0 %v4626_v46  ;;  %v4578_v46 = vcombine.low %v655_v15, %v659_v28  ;;  %v871_v9 = vld [vmem:[#allocation8 + $0xed0] sm:$0xff] }
 0x226   :  { %3987 = vmatpush1.bf16.msra.mxu1 %v4754_v48  ;;  %3945 = vmatprep.subr.bf16.mxu0 %v4619_v49  ;;  %v4706_v48 = vcombine.low %v783_v17, %v787_v19  ;;  %v4699_v49 = vcombine.high %v775_v39, %v779_v40  ;;  %v875_v59 = vld [vmem:[#allocation8 + $0xef0] sm:$0xff] }
 0x227   :  { %3988 = vmatprep.subr.bf16.mxu1 %v4747_v50  ;;  %v4827_v50 = vcombine.high %v903_v41, %v907_v44  ;;  %v735_v15 = vld [vmem:[#allocation8 + $0xa90] sm:$0xff] }
 0x228   :  { %v739_v28 = vld [vmem:[#allocation8 + $0xab0] sm:$0xff] }
 0x229   :  { %3946 = vmatpush1.bf16.msra.mxu0 %v4618_v52  ;;  %v4698_v52 = vcombine.low %v775_v39, %v779_v40  ;;  %v863_v17 = vld [vmem:[#allocation8 + $0xe90] sm:$0xff] }
 0x22a   :  { %3989 = vmatpush1.bf16.msra.mxu1 %v4746_v22  ;;  %3947 = vmatprep.subr.bf16.mxu0 %v4611_v24  ;;  %v4826_v22 = vcombine.low %v903_v41, %v907_v44  ;;  %v4691_v24 = vcombine.high %v767_v51, %v771_v20  ;;  %v867_v19 = vld [vmem:[#allocation8 + $0xeb0] sm:$0xff] }
 0x22b   :  { %3990 = vmatprep.subr.bf16.mxu1 %v4739_v29  ;;  %v4819_v29 = vcombine.high %v895_v21, %v899_v25  ;;  %v727_v39 = vld [vmem:[#allocation8 + $0xa50] sm:$0xff] }
 0x22c   :  { %v731_v40 = vld [vmem:[#allocation8 + $0xa70] sm:$0xff] }
 0x22d   :  { %3948 = vmatpush1.bf16.msra.mxu0 %v4610_v58  ;;  %v4690_v58 = vcombine.low %v767_v51, %v771_v20  ;;  %v855_v41 = vld [vmem:[#allocation8 + $0xe50] sm:$0xff] }
 0x22e   :  { %3991 = vmatpush1.bf16.msra.mxu1 %v4738_v60  ;;  %3949 = vmatprep.subr.bf16.mxu0 %v4603_v61  ;;  %v4818_v60 = vcombine.low %v895_v21, %v899_v25  ;;  %v4683_v61 = vcombine.high %v759_v54, %v763_v55  ;;  %v859_v44 = vld [vmem:[#allocation8 + $0xe70] sm:$0xff] }
 0x22f   :  { %3992 = vmatprep.subr.bf16.mxu1 %v4731_v62  ;;  %v4811_v62 = vcombine.high %v887_v56, %v891_v57  ;;  %v719_v51 = vld [vmem:[#allocation8 + $0xa10] sm:$0xff] }
 0x230   :  { %v723_v20 = vld [vmem:[#allocation8 + $0xa30] sm:$0xff] }
 0x231   :  { %3950 = vmatpush1.bf16.msra.mxu0 %v4602_v3  ;;  %v4682_v3 = vcombine.low %v759_v54, %v763_v55  ;;  %v847_v21 = vld [vmem:[#allocation8 + $0xe10] sm:$0xff]  ;;  %v456_v54 = vld [vmem:[#allocation8 + $0x1d8] sm:$0xff] }
 0x232   :  { %3993 = vmatpush1.bf16.msra.mxu1 %v4730_v4  ;;  %3951 = vmatprep.subr.bf16.mxu0 %v4595_v5  ;;  %v4810_v4 = vcombine.low %v887_v56, %v891_v57  ;;  %v4675_v5 = vcombine.high %v751_v63, %v755_v0  ;;  %v851_v25 = vld [vmem:[#allocation8 + $0xe30] sm:$0xff]  ;;  %v460_v55 = vld [vmem:[#allocation8 + $0x1f8] sm:$0xff] }
 0x233   :  { %3994 = vmatprep.subr.bf16.mxu1 %v4723_v6  ;;  %v4803_v6 = vcombine.high %v879_v33, %v883_v1  ;;  %v584_v56 = vld [vmem:[#allocation8 + $0x5d8] sm:$0xff] }
 0x234   :  { %v588_v57 = vld [vmem:[#allocation8 + $0x5f8] sm:$0xff] }
 0x235   :  { %3952 = vmatpush1.bf16.msra.mxu0 %v4594_v16  ;;  %v4674_v16 = vcombine.low %v751_v63, %v755_v0  ;;  %v448_v63 = vld [vmem:[#allocation8 + $0x198] sm:$0xff] }
 0x236   :  { %3995 = vmatpush1.bf16.msra.mxu1 %v4722_v11  ;;  %3953 = vmatprep.subr.bf16.mxu0 %v4587_v12  ;;  %v4802_v11 = vcombine.low %v879_v33, %v883_v1  ;;  %v4667_v12 = vcombine.high %v743_v7, %v747_v8  ;;  %v452_v0 = vld [vmem:[#allocation8 + $0x1b8] sm:$0xff]  ;;  %v4380_v33 = vcombine.low %v456_v54, %v460_v55 }
 0x237   :  { %3996 = vmatprep.subr.bf16.mxu1 %v4715_v2  ;;  %v4795_v2 = vcombine.high %v871_v9, %v875_v59  ;;  %v576_v1 = vld [vmem:[#allocation8 + $0x598] sm:$0xff] }
 0x239   :  { %3954 = vmatpush1.bf16.msra.mxu0 %v4586_v23  ;;  %v4666_v23 = vcombine.low %v743_v7, %v747_v8  ;;  %v444_v7 = vld [vmem:[#allocation8 + $0x178] sm:$0xff] }
 0x23a   :  { %3997 = vmatpush1.bf16.msra.mxu1 %v4714_v35  ;;  %3955 = vmatprep.subr.bf16.mxu0 %v4579_v37  ;;  %v4794_v35 = vcombine.low %v871_v9, %v875_v59  ;;  %v4659_v37 = vcombine.high %v735_v15, %v739_v28  ;;  %v568_v9 = vld [vmem:[#allocation8 + $0x558] sm:$0xff] }
 0x23b   :  { %3998 = vmatprep.subr.bf16.mxu1 %v4707_v38  ;;  %v4787_v38 = vcombine.high %v863_v17, %v867_v19  ;;  %v572_v59 = vld [vmem:[#allocation8 + $0x578] sm:$0xff] }
 0x23d   :  { %3956 = vmatpush1.bf16.msra.mxu0 %v4578_v46  ;;  %v4658_v46 = vcombine.low %v735_v15, %v739_v28  ;;  %v432_v15 = vld [vmem:[#allocation8 + $0x118] sm:$0xff] }
 0x23e   :  { %3999 = vmatpush1.bf16.msra.mxu1 %v4706_v48  ;;  %3957 = vmatprep.subr.bf16.mxu0 %v4699_v49  ;;  %v4786_v48 = vcombine.low %v863_v17, %v867_v19  ;;  %v4651_v49 = vcombine.high %v727_v39, %v731_v40  ;;  %v436_v28 = vld [vmem:[#allocation8 + $0x138] sm:$0xff] }
 0x23f   :  { %4000 = vmatprep.subr.bf16.mxu1 %v4827_v50  ;;  %v4779_v50 = vcombine.high %v855_v41, %v859_v44  ;;  %v560_v17 = vld [vmem:[#allocation8 + $0x518] sm:$0xff] }
 0x240   :  { %v564_v19 = vld [vmem:[#allocation8 + $0x538] sm:$0xff] }
 0x241   :  { %3958 = vmatpush2.bf16.msra.mxu0 %v4698_v52  ;;  %v4650_v52 = vcombine.low %v727_v39, %v731_v40  ;;  %v428_v39 = vld [vmem:[#allocation8 + $0xf8] sm:$0xff] }
 0x242   :  { %4001 = vmatpush2.bf16.msra.mxu1 %v4826_v22  ;;  %3959 = vmatprep.subr.bf16.mxu0 %v4691_v24  ;;  %v4778_v22 = vcombine.low %v855_v41, %v859_v44  ;;  %v4643_v24 = vcombine.high %v719_v51, %v723_v20  ;;  %v552_v40 = vld [vmem:[#allocation8 + $0x4d8] sm:$0xff]  ;;  %v4484_v44 = vcombine.low %v560_v17, %v564_v19 }
 0x243   :  { %4002 = vmatprep.subr.bf16.mxu1 %v4819_v29  ;;  %v4771_v29 = vcombine.high %v847_v21, %v851_v25  ;;  %v556_v41 = vld [vmem:[#allocation8 + $0x4f8] sm:$0xff] }
 0x245   :  { %3960 = vmatpush2.bf16.msra.mxu0 %v4690_v58  ;;  %v4642_v58 = vcombine.low %v719_v51, %v723_v20  ;;  %v544_v51 = vld [vmem:[#allocation8 + $0x498] sm:$0xff] }
 0x246   :  { %4003 = vmatpush2.bf16.msra.mxu1 %v4818_v60  ;;  %3961 = vmatprep.subr.bf16.mxu0 %v4683_v61  ;;  %v4770_v60 = vcombine.low %v847_v21, %v851_v25  ;;  %v4381_v61 = vcombine.high %v456_v54, %v460_v55  ;;  %v548_v20 = vld [vmem:[#allocation8 + $0x4b8] sm:$0xff]  ;;  %v4476_v25 = vcombine.low %v552_v40, %v556_v41 }
 0x247   :  { %4004 = vmatprep.subr.bf16.mxu1 %v4811_v62  ;;  %v4509_v62 = vcombine.high %v584_v56, %v588_v57  ;;  %v536_v54 = vld [vmem:[#allocation8 + $0x458] sm:$0xff] }
 0x248   :  { %v540_v55 = vld [vmem:[#allocation8 + $0x478] sm:$0xff] }
 0x249   :  { %3962 = vmatpush2.bf16.msra.mxu0 %v4682_v3  ;;  %v580_v3 = vld [vmem:[#allocation8 + $0x5b8] sm:$0xff] }
 0x24a   :  { %4005 = vmatpush2.bf16.msra.mxu1 %v4810_v4  ;;  %3963 = vmatprep.subr.bf16.mxu0 %v4675_v5  ;;  %v4508_v4 = vcombine.low %v584_v56, %v588_v57  ;;  %v4373_v5 = vcombine.high %v448_v63, %v452_v0  ;;  %v4501_v8 = vcombine.high %v576_v1, %v580_v3 }
 0x24b   :  { %4006 = vmatprep.subr.bf16.mxu1 %v4803_v6  ;;  %v440_v6 = vld [vmem:[#allocation8 + $0x158] sm:$0xff]  ;;  %v4468_v57 = vcombine.low %v544_v51, %v548_v20 }
 0x24d   :  { %3964 = vmatpush2.bf16.msra.mxu0 %v4674_v16  ;;  %v4372_v16 = vcombine.low %v448_v63, %v452_v0  ;;  %v528_v63 = vld [vmem:[#allocation8 + $0x418] sm:$0xff] }
 0x24e   :  { %4007 = vmatpush2.bf16.msra.mxu1 %v4802_v11  ;;  %3965 = vmatprep.subr.bf16.mxu0 %v4667_v12  ;;  %v4500_v11 = vcombine.low %v576_v1, %v580_v3  ;;  %v4365_v12 = vcombine.high %v440_v6, %v444_v7  ;;  %v532_v0 = vld [vmem:[#allocation8 + $0x438] sm:$0xff]  ;;  %v4460_v1 = vcombine.low %v536_v54, %v540_v55 }
 0x24f   :  { %4008 = vmatprep.subr.bf16.mxu1 %v4795_v2  ;;  %v4493_v2 = vcombine.high %v568_v9, %v572_v59 }
 0x251   :  { %3966 = vmatpush2.bf16.msra.mxu0 %v4666_v23  ;;  %v4364_v23 = vcombine.low %v440_v6, %v444_v7  ;;  %v524_v6 = vld [vmem:[#allocation8 + $0x3f8] sm:$0xff] }
 0x252   :  { %4009 = vmatpush2.bf16.msra.mxu1 %v4794_v35  ;;  %3967 = vmatprep.subr.bf16.mxu0 %v4659_v37  ;;  %v4492_v35 = vcombine.low %v568_v9, %v572_v59  ;;  %v4357_v37 = vcombine.high %v432_v15, %v436_v28  ;;  %v648_v7 = vld [vmem:[#allocation8 + $0x7d8] sm:$0xff]  ;;  %v4452_v59 = vcombine.low %v528_v63, %v532_v0 }
 0x253   :  { %4010 = vmatprep.subr.bf16.mxu1 %v4787_v38  ;;  %v424_v38 = vld [vmem:[#allocation8 + $0xd8] sm:$0xff] }
 0x254   :  { %v4348_v21 = vcombine.low %v424_v38, %v428_v39 }
 0x255   :  { %3968 = vmatpush2.bf16.msra.mxu0 %v4658_v46  ;;  %v4349_v46 = vcombine.high %v424_v38, %v428_v39  ;;  %v632_v38 = vld [vmem:[#allocation8 + $0x758] sm:$0xff] }
 0x256   :  { %4011 = vmatpush2.bf16.msra.mxu1 %v4786_v48  ;;  %3969 = vmatprep.subr.bf16.mxu0 %v4651_v49  ;;  %v4477_v48 = vcombine.high %v552_v40, %v556_v41  ;;  %v416_v49 = vld [vmem:[#allocation8 + $0x98] sm:$0xff] }
 0x257   :  { %4012 = vmatprep.subr.bf16.mxu1 %v4779_v50  ;;  %v420_v50 = vld [vmem:[#allocation8 + $0xb8] sm:$0xff] }
 0x258   :  { %v4340_v56 = vcombine.low %v416_v49, %v420_v50  ;;  %v636_v39 = vld [vmem:[#allocation8 + $0x778] sm:$0xff] }
 0x259   :  { %3970 = vmatpush2.bf16.msra.mxu0 %v4650_v52  ;;  %v4341_v52 = vcombine.high %v416_v49, %v420_v50  ;;  %v624_v49 = vld [vmem:[#allocation8 + $0x718] sm:$0xff] }
 0x25a   :  { %4013 = vmatpush2.bf16.msra.mxu1 %v4778_v22  ;;  %3971 = vmatprep.subr.bf16.mxu0 %v4643_v24  ;;  %v4469_v22 = vcombine.high %v544_v51, %v548_v20  ;;  %v408_v24 = vld [vmem:[#allocation8 + $0x58] sm:$0xff]  ;;  %v4556_v20 = vcombine.low %v632_v38, %v636_v39 }
 0x25b   :  { %4014 = vmatprep.subr.bf16.mxu1 %v4771_v29  ;;  %v412_v29 = vld [vmem:[#allocation8 + $0x78] sm:$0xff] }
 0x25c   :  { %v628_v50 = vld [vmem:[#allocation8 + $0x738] sm:$0xff] }
 0x25d   :  { %3972 = vmatpush2.bf16.msra.mxu0 %v4642_v58  ;;  %v4333_v58 = vcombine.high %v408_v24, %v412_v29 }
 0x25e   :  { %4015 = vmatpush2.bf16.msra.mxu1 %v4770_v60  ;;  %4027 = vmatprep.subr.bf16.mxu0 %v4381_v61  ;;  %v4461_v60 = vcombine.high %v536_v54, %v540_v55  ;;  %v400_v61 = vld [vmem:[#allocation8 + $0x18] sm:$0xff]  ;;  %v4548_v55 = vcombine.low %v624_v49, %v628_v50 }
 0x25f   :  { %4070 = vmatprep.subr.bf16.mxu1 %v4509_v62  ;;  %v404_v62 = vld [vmem:[#allocation8 + $0x38] sm:$0xff] }
 0x260   :  { %3974 = vmatmul.mubr.bf16.vlgmr.msra.gmra.mxu0 %v5138_v27  ;;  %v4325_v3 = vcombine.high %v400_v61, %v404_v62  ;;  %v4324_v9 = vcombine.low %v400_v61, %v404_v62  ;;  %v608_v61 = vld [vmem:[#allocation8 + $0x698] sm:$0xff] }
 0x261   :  { %4017 = vmatmul.mubr.bf16.vlgmr.msra.gmra.mxu1 %v5140_v36  ;;  %4028 = vmatpush1.bf16.msra.mxu0 %v4380_v33  ;;  %v4332_v33 = vcombine.low %v408_v24, %v412_v29  ;;  %v616_v24 = vld [vmem:[#allocation8 + $0x6d8] sm:$0xff] }
 0x262   :  { %4059 = vmatprep.mubr.bf16.mxu0 %v5096_v10  ;;  %4071 = vmatpush1.bf16.msra.mxu1 %v4508_v4  ;;  %v4485_v10 = vcombine.high %v560_v17, %v564_v19  ;;  %v4453_v4 = vcombine.high %v528_v63, %v532_v0  ;;  %v620_v29 = vld [vmem:[#allocation8 + $0x6f8] sm:$0xff] }
 0x263   :  { %4102 = vmatprep.mubr.bf16.mxu1 %v5100_v14  ;;  %4029 = vmatprep.subr.bf16.mxu0 %v4373_v5  ;;  %v4356_v14 = vcombine.low %v432_v15, %v436_v28  ;;  %v520_v5 = vld [vmem:[#allocation8 + $0x3d8] sm:$0xff]  ;;  %v4540_v0 = vcombine.low %v616_v24, %v620_v29 }
 0x264   :  { %4072 = vmatprep.subr.bf16.mxu1 %v4501_v8  ;;  %v652_v8 = vld [vmem:[#allocation8 + $0x7f8] sm:$0xff]  ;;  %v4444_v17 = vcombine.low %v520_v5, %v524_v6 }
 0x265   :  { %4030 = vmatpush1.bf16.msra.mxu0 %v4372_v16  ;;  %v4445_v16 = vcombine.high %v520_v5, %v524_v6  ;;  %v640_v15 = vld [vmem:[#allocation8 + $0x798] sm:$0xff]  ;;  %v4572_v19 = vcombine.low %v648_v7, %v652_v8 }
 0x266   :  { %4073 = vmatpush1.bf16.msra.mxu1 %v4500_v11  ;;  %4031 = vmatprep.subr.bf16.mxu0 %v4365_v12  ;;  %v4573_v11 = vcombine.high %v648_v7, %v652_v8  ;;  %v512_v12 = vld [vmem:[#allocation8 + $0x398] sm:$0xff] }
 0x267   :  { %4074 = vmatprep.subr.bf16.mxu1 %v4493_v2  ;;  %v516_v2 = vld [vmem:[#allocation8 + $0x3b8] sm:$0xff] }
 0x268   :  { %v644_v28 = vld [vmem:[#allocation8 + $0x7b8] sm:$0xff]  ;;  %v4436_v40 = vcombine.low %v512_v12, %v516_v2 }
 0x269   :  { %4032 = vmatpush1.bf16.msra.mxu0 %v4364_v23  ;;  %v4437_v23 = vcombine.high %v512_v12, %v516_v2  ;;  %v4564_v41 = vcombine.low %v640_v15, %v644_v28  ;;  %v612_v62 = vld [vmem:[#allocation8 + $0x6b8] sm:$0xff] }
 0x26a   :  { %4075 = vmatpush1.bf16.msra.mxu1 %v4492_v35  ;;  %4033 = vmatprep.subr.bf16.mxu0 %v4357_v37  ;;  %v4565_v35 = vcombine.high %v640_v15, %v644_v28  ;;  %v504_v37 = vld [vmem:[#allocation8 + $0x358] sm:$0xff]  ;;  %v4532_v8 = vcombine.low %v608_v61, %v612_v62 }
 0x26b   :  { %4076 = vmatprep.subr.bf16.mxu1 %v4485_v10  ;;  %v508_v10 = vld [vmem:[#allocation8 + $0x378] sm:$0xff] }
 0x26c   :  { %v4428_v51 = vcombine.low %v504_v37, %v508_v10  ;;  %v600_v5 = vld [vmem:[#allocation8 + $0x658] sm:$0xff] }
 0x26d   :  { %4034 = vmatpush1.bf16.msra.mxu0 %v4356_v14  ;;  %v4429_v14 = vcombine.high %v504_v37, %v508_v10  ;;  %v604_v6 = vld [vmem:[#allocation8 + $0x678] sm:$0xff] }
 0x26e   :  { %4077 = vmatpush1.bf16.msra.mxu1 %v4484_v44  ;;  %4035 = vmatprep.subr.bf16.mxu0 %v4349_v46  ;;  %v4557_v44 = vcombine.high %v632_v38, %v636_v39  ;;  %v496_v46 = vld [vmem:[#allocation8 + $0x318] sm:$0xff]  ;;  %v4524_v28 = vcombine.low %v600_v5, %v604_v6 }
 0x26f   :  { %4078 = vmatprep.subr.bf16.mxu1 %v4477_v48  ;;  %v500_v48 = vld [vmem:[#allocation8 + $0x338] sm:$0xff] }
 0x270   :  { %v4420_v54 = vcombine.low %v496_v46, %v500_v48  ;;  %v592_v12 = vld [vmem:[#allocation8 + $0x618] sm:$0xff] }
 0x271   :  { %4036 = vmatpush1.bf16.msra.mxu0 %v4348_v21  ;;  %v4421_v21 = vcombine.high %v496_v46, %v500_v48  ;;  %v596_v2 = vld [vmem:[#allocation8 + $0x638] sm:$0xff] }
 0x272   :  { %4079 = vmatpush1.bf16.msra.mxu1 %v4476_v25  ;;  %4037 = vmatprep.subr.bf16.mxu0 %v4341_v52  ;;  %v4549_v25 = vcombine.high %v624_v49, %v628_v50  ;;  %v488_v52 = vld [vmem:[#allocation8 + $0x2d8] sm:$0xff]  ;;  %v4516_v39 = vcombine.low %v592_v12, %v596_v2 }
 0x273   :  { %4080 = vmatprep.subr.bf16.mxu1 %v4469_v22  ;;  %v492_v22 = vld [vmem:[#allocation8 + $0x2f8] sm:$0xff] }
 0x274   :  { %v4412_v63 = vcombine.low %v488_v52, %v492_v22  ;;  %v840_v37 = vld [vmem:[#allocation8 + $0xdd8] sm:$0xff] }
 0x275   :  { %4038 = vmatpush1.bf16.msra.mxu0 %v4340_v56  ;;  %v4413_v56 = vcombine.high %v488_v52, %v492_v22  ;;  %v844_v10 = vld [vmem:[#allocation8 + $0xdf8] sm:$0xff] }
 0x276   :  { %4081 = vmatpush1.bf16.msra.mxu1 %v4468_v57  ;;  %4039 = vmatprep.subr.bf16.mxu0 %v4333_v58  ;;  %v4541_v57 = vcombine.high %v616_v24, %v620_v29  ;;  %v480_v58 = vld [vmem:[#allocation8 + $0x298] sm:$0xff]  ;;  %v4764_v50 = vcombine.low %v840_v37, %v844_v10 }
 0x277   :  { %4082 = vmatprep.subr.bf16.mxu1 %v4461_v60  ;;  %v484_v60 = vld [vmem:[#allocation8 + $0x2b8] sm:$0xff] }
 0x278   :  { %v4404_v7 = vcombine.low %v480_v58, %v484_v60  ;;  %v832_v48 = vld [vmem:[#allocation8 + $0xd98] sm:$0xff] }
 0x279   :  { %4040 = vmatpush1.bf16.msra.mxu0 %v4332_v33  ;;  %v4405_v33 = vcombine.high %v480_v58, %v484_v60  ;;  %v836_v49 = vld [vmem:[#allocation8 + $0xdb8] sm:$0xff] }
 0x27a   :  { %4083 = vmatpush1.bf16.msra.mxu1 %v4460_v1  ;;  %4041 = vmatprep.subr.bf16.mxu0 %v4325_v3  ;;  %v4533_v1 = vcombine.high %v608_v61, %v612_v62  ;;  %v472_v3 = vld [vmem:[#allocation8 + $0x258] sm:$0xff]  ;;  %v4756_v29 = vcombine.low %v832_v48, %v836_v49 }
 0x27b   :  { %4084 = vmatprep.subr.bf16.mxu1 %v4453_v4  ;;  %v476_v4 = vld [vmem:[#allocation8 + $0x278] sm:$0xff] }
 0x27c   :  { %v4396_v15 = vcombine.low %v472_v3, %v476_v4  ;;  %v824_v52 = vld [vmem:[#allocation8 + $0xd58] sm:$0xff] }
 0x27d   :  { %4042 = vmatpush1.bf16.msra.mxu0 %v4324_v9  ;;  %v4397_v9 = vcombine.high %v472_v3, %v476_v4  ;;  %v828_v22 = vld [vmem:[#allocation8 + $0xd78] sm:$0xff] }
 0x27e   :  { %4085 = vmatpush1.bf16.msra.mxu1 %v4452_v59  ;;  %4043 = vmatprep.subr.bf16.mxu0 %v4445_v16  ;;  %v4525_v59 = vcombine.high %v600_v5, %v604_v6  ;;  %v464_v16 = vld [vmem:[#allocation8 + $0x218] sm:$0xff] }
 0x27f   :  { %4086 = vmatprep.subr.bf16.mxu1 %v4573_v11  ;;  %v468_v11 = vld [vmem:[#allocation8 + $0x238] sm:$0xff] }
 0x280   :  { %v4388_v38 = vcombine.low %v464_v16, %v468_v11  ;;  %v820_v58 = vld [vmem:[#allocation8 + $0xd38] sm:$0xff] }
 0x281   :  { %4044 = vmatpush2.bf16.msra.mxu0 %v4444_v17  ;;  %v4389_v17 = vcombine.high %v464_v16, %v468_v11  ;;  %v680_v62 = vld [vmem:[#allocation8 + $0x8d8] sm:$0xff] }
 0x282   :  { %4087 = vmatpush2.bf16.msra.mxu1 %v4572_v19  ;;  %4045 = vmatprep.subr.bf16.mxu0 %v4437_v23  ;;  %v4517_v19 = vcombine.high %v592_v12, %v596_v2  ;;  %v712_v23 = vld [vmem:[#allocation8 + $0x9d8] sm:$0xff] }
 0x283   :  { %4088 = vmatprep.subr.bf16.mxu1 %v4565_v35  ;;  %v716_v35 = vld [vmem:[#allocation8 + $0x9f8] sm:$0xff] }
 0x284   :  { %v4636_v46 = vcombine.low %v712_v23, %v716_v35  ;;  %v672_v5 = vld [vmem:[#allocation8 + $0x898] sm:$0xff] }
 0x285   :  { %4046 = vmatpush2.bf16.msra.mxu0 %v4436_v40  ;;  %v4637_v40 = vcombine.high %v712_v23, %v716_v35  ;;  %v676_v6 = vld [vmem:[#allocation8 + $0x8b8] sm:$0xff] }
 0x286   :  { %4089 = vmatpush2.bf16.msra.mxu1 %v4564_v41  ;;  %4047 = vmatprep.subr.bf16.mxu0 %v4429_v14  ;;  %v4765_v41 = vcombine.high %v840_v37, %v844_v10  ;;  %v704_v14 = vld [vmem:[#allocation8 + $0x998] sm:$0xff]  ;;  %v4597_v16 = vcombine.high %v672_v5, %v676_v6 }
 0x287   :  { %4090 = vmatprep.subr.bf16.mxu1 %v4557_v44  ;;  %v708_v44 = vld [vmem:[#allocation8 + $0x9b8] sm:$0xff] }
 0x288   :  { %v4628_v24 = vcombine.low %v704_v14, %v708_v44  ;;  %v664_v12 = vld [vmem:[#allocation8 + $0x858] sm:$0xff] }
 0x289   :  { %4048 = vmatpush2.bf16.msra.mxu0 %v4428_v51  ;;  %v4629_v51 = vcombine.high %v704_v14, %v708_v44  ;;  %v668_v2 = vld [vmem:[#allocation8 + $0x878] sm:$0xff] }
 0x28a   :  { %4091 = vmatpush2.bf16.msra.mxu1 %v4556_v20  ;;  %4049 = vmatprep.subr.bf16.mxu0 %v4421_v21  ;;  %v696_v20 = vld [vmem:[#allocation8 + $0x958] sm:$0xff]  ;;  %v4589_v23 = vcombine.high %v664_v12, %v668_v2 }
 0x28b   :  { %4092 = vmatprep.subr.bf16.mxu1 %v4549_v25  ;;  %v700_v21 = vld [vmem:[#allocation8 + $0x978] sm:$0xff]  ;;  %v4757_v25 = vcombine.high %v832_v48, %v836_v49 }
 0x28c   :  { %v4620_v60 = vcombine.low %v696_v20, %v700_v21  ;;  %v656_v37 = vld [vmem:[#allocation8 + $0x818] sm:$0xff] }
 0x28d   :  { %4050 = vmatpush2.bf16.msra.mxu0 %v4420_v54  ;;  %v4621_v54 = vcombine.high %v696_v20, %v700_v21  ;;  %v660_v10 = vld [vmem:[#allocation8 + $0x838] sm:$0xff] }
 0x28e   :  { %4093 = vmatpush2.bf16.msra.mxu1 %v4548_v55  ;;  %4051 = vmatprep.subr.bf16.mxu0 %v4413_v56  ;;  %v4749_v55 = vcombine.high %v824_v52, %v828_v22  ;;  %v688_v56 = vld [vmem:[#allocation8 + $0x918] sm:$0xff]  ;;  %v4581_v14 = vcombine.high %v656_v37, %v660_v10 }
 0x28f   :  { %4094 = vmatprep.subr.bf16.mxu1 %v4541_v57  ;;  %v692_v57 = vld [vmem:[#allocation8 + $0x938] sm:$0xff] }
 0x290   :  { %v4613_v61 = vcombine.high %v688_v56, %v692_v57  ;;  %v780_v48 = vld [vmem:[#allocation8 + $0xbf8] sm:$0xff] }
 0x291   :  { %4052 = vmatpush2.bf16.msra.mxu0 %v4412_v63  ;;  %v684_v63 = vld [vmem:[#allocation8 + $0x8f8] sm:$0xff] }
 0x292   :  { %4095 = vmatpush2.bf16.msra.mxu1 %v4540_v0  ;;  %4053 = vmatprep.subr.bf16.mxu0 %v4405_v33  ;;  %v808_v0 = vld [vmem:[#allocation8 + $0xcd8] sm:$0xff]  ;;  %v4605_v3 = vcombine.high %v680_v62, %v684_v63 }
 0x293   :  { %4096 = vmatprep.subr.bf16.mxu1 %v4533_v1  ;;  %v812_v33 = vld [vmem:[#allocation8 + $0xcf8] sm:$0xff] }
 0x294   :  { %v4733_v4 = vcombine.high %v808_v0, %v812_v33  ;;  %v904_v49 = vld [vmem:[#allocation8 + $0xfd8] sm:$0xff] }
 0x295   :  { %4054 = vmatpush2.bf16.msra.mxu0 %v4404_v7  ;;  %v800_v7 = vld [vmem:[#allocation8 + $0xc98] sm:$0xff] }
 0x296   :  { %4097 = vmatpush2.bf16.msra.mxu1 %v4532_v8  ;;  %4055 = vmatprep.subr.bf16.mxu0 %v4397_v9  ;;  %v804_v8 = vld [vmem:[#allocation8 + $0xcb8] sm:$0xff]  ;;  %v4604_v9 = vcombine.low %v680_v62, %v684_v63 }
 0x297   :  { %4098 = vmatprep.subr.bf16.mxu1 %v4525_v59  ;;  %v4732_v59 = vcombine.low %v808_v0, %v812_v33  ;;  %v4725_v11 = vcombine.high %v800_v7, %v804_v8  ;;  %v752_v0 = vld [vmem:[#allocation8 + $0xb18] sm:$0xff] }
 0x298   :  { %v756_v33 = vld [vmem:[#allocation8 + $0xb38] sm:$0xff] }
 0x299   :  { %4056 = vmatpush2.bf16.msra.mxu0 %v4396_v15  ;;  %v792_v15 = vld [vmem:[#allocation8 + $0xc58] sm:$0xff] }
 0x29a   :  { %4099 = vmatpush2.bf16.msra.mxu1 %v4524_v28  ;;  %4057 = vmatprep.subr.bf16.mxu0 %v4389_v17  ;;  %v796_v28 = vld [vmem:[#allocation8 + $0xc78] sm:$0xff]  ;;  %v4596_v17 = vcombine.low %v672_v5, %v676_v6  ;;  %v4677_v5 = vcombine.high %v752_v0, %v756_v33 }
 0x29b   :  { %4100 = vmatprep.subr.bf16.mxu1 %v4517_v19  ;;  %v4724_v19 = vcombine.low %v800_v7, %v804_v8  ;;  %v4717_v35 = vcombine.high %v792_v15, %v796_v28  ;;  %v744_v7 = vld [vmem:[#allocation8 + $0xad8] sm:$0xff] }
 0x29c   :  { %v748_v8 = vld [vmem:[#allocation8 + $0xaf8] sm:$0xff] }
 0x29d   :  { %4058 = vmatpush2.bf16.msra.mxu0 %v4388_v38  ;;  %v784_v38 = vld [vmem:[#allocation8 + $0xc18] sm:$0xff] }
 0x29e   :  { %4101 = vmatpush2.bf16.msra.mxu1 %v4516_v39  ;;  %4113 = vmatprep.subr.bf16.mxu0 %v4637_v40  ;;  %v788_v39 = vld [vmem:[#allocation8 + $0xc38] sm:$0xff]  ;;  %v4588_v40 = vcombine.low %v664_v12, %v668_v2  ;;  %v4669_v12 = vcombine.high %v744_v7, %v748_v8 }
 0x29f   :  { %4156 = vmatprep.subr.bf16.mxu1 %v4765_v41  ;;  %v4716_v41 = vcombine.low %v792_v15, %v796_v28  ;;  %v4709_v44 = vcombine.high %v784_v38, %v788_v39  ;;  %v4708_v20 = vcombine.low %v784_v38, %v788_v39  ;;  %v736_v15 = vld [vmem:[#allocation8 + $0xa98] sm:$0xff] }
 0x2a0   :  { %4060 = vmatmul.mubr.bf16.vlgmr.msra.gmra.mxu0 %v5098_v13  ;;  %v816_v13 = vld [vmem:[#allocation8 + $0xd18] sm:$0xff] }
 0x2a1   :  { %4103 = vmatmul.mubr.bf16.vlgmr.msra.gmra.mxu1 %v5104_v18  ;;  %4114 = vmatpush1.bf16.msra.mxu0 %v4636_v46  ;;  %v4748_v18 = vcombine.low %v824_v52, %v828_v22  ;;  %v4740_v1 = vcombine.low %v816_v13, %v820_v58  ;;  %v776_v46 = vld [vmem:[#allocation8 + $0xbd8] sm:$0xff] }
 0x2a2   :  { %4145 = vmatprep.mubr.bf16.mxu0 %v5118_v53  ;;  %4157 = vmatpush1.bf16.msra.mxu1 %v4764_v50  ;;  %v4741_v53 = vcombine.high %v816_v13, %v820_v58  ;;  %v908_v50 = vld [vmem:[#allocation8 + $0xff8] sm:$0xff]  ;;  %v4701_v21 = vcombine.high %v776_v46, %v780_v48 }
 0x2a3   :  { %4188 = vmatprep.mubr.bf16.mxu1 %v5120_v26  ;;  %4115 = vmatprep.subr.bf16.mxu0 %v4629_v51  ;;  %v4612_v26 = vcombine.low %v688_v56, %v692_v57  ;;  %v4580_v51 = vcombine.low %v656_v37, %v660_v10  ;;  %v768_v52 = vld [vmem:[#allocation8 + $0xb98] sm:$0xff] }
 0x2a4   :  { %4158 = vmatprep.subr.bf16.mxu1 %v4757_v25  ;;  %v4829_v25 = vcombine.high %v904_v49, %v908_v50  ;;  %v772_v22 = vld [vmem:[#allocation8 + $0xbb8] sm:$0xff] }
 0x2a5   :  { %4116 = vmatpush1.bf16.msra.mxu0 %v4628_v24  ;;  %v896_v24 = vld [vmem:[#allocation8 + $0xf98] sm:$0xff]  ;;  %v4693_v56 = vcombine.high %v768_v52, %v772_v22 }
 0x2a6   :  { %4159 = vmatpush1.bf16.msra.mxu1 %v4756_v29  ;;  %4117 = vmatprep.subr.bf16.mxu0 %v4621_v54  ;;  %v900_v29 = vld [vmem:[#allocation8 + $0xfb8] sm:$0xff]  ;;  %v4700_v54 = vcombine.low %v776_v46, %v780_v48 }
 0x2a7   :  { %4160 = vmatprep.subr.bf16.mxu1 %v4749_v55  ;;  %v4828_v55 = vcombine.low %v904_v49, %v908_v50  ;;  %v4821_v57 = vcombine.high %v896_v24, %v900_v29  ;;  %v760_v13 = vld [vmem:[#allocation8 + $0xb58] sm:$0xff] }
 0x2a8   :  { %v764_v58 = vld [vmem:[#allocation8 + $0xb78] sm:$0xff] }
 0x2a9   :  { %4118 = vmatpush1.bf16.msra.mxu0 %v4620_v60  ;;  %v888_v60 = vld [vmem:[#allocation8 + $0xf58] sm:$0xff]  ;;  %v4685_v62 = vcombine.high %v760_v13, %v764_v58 }
 0x2aa   :  { %4161 = vmatpush1.bf16.msra.mxu1 %v4748_v18  ;;  %4119 = vmatprep.subr.bf16.mxu0 %v4613_v61  ;;  %v892_v18 = vld [vmem:[#allocation8 + $0xf78] sm:$0xff]  ;;  %v4692_v61 = vcombine.low %v768_v52, %v772_v22 }
 0x2ab   :  { %4162 = vmatprep.subr.bf16.mxu1 %v4741_v53  ;;  %v4820_v53 = vcombine.low %v896_v24, %v900_v29  ;;  %v4813_v63 = vcombine.high %v888_v60, %v892_v18  ;;  %v740_v28 = vld [vmem:[#allocation8 + $0xab8] sm:$0xff] }
 0x2ac   :  { %v4661_v37 = vcombine.high %v736_v15, %v740_v28  ;;  %v728_v38 = vld [vmem:[#allocation8 + $0xa58] sm:$0xff] }
 0x2ad   :  { %4120 = vmatpush1.bf16.msra.mxu0 %v4612_v26  ;;  %v880_v26 = vld [vmem:[#allocation8 + $0xf18] sm:$0xff] }
 0x2ae   :  { %4163 = vmatpush1.bf16.msra.mxu1 %v4740_v1  ;;  %4121 = vmatprep.subr.bf16.mxu0 %v4605_v3  ;;  %v884_v1 = vld [vmem:[#allocation8 + $0xf38] sm:$0xff]  ;;  %v4684_v3 = vcombine.low %v760_v13, %v764_v58 }
 0x2af   :  { %4164 = vmatprep.subr.bf16.mxu1 %v4733_v4  ;;  %v4812_v4 = vcombine.low %v888_v60, %v892_v18  ;;  %v4805_v6 = vcombine.high %v880_v26, %v884_v1  ;;  %v732_v39 = vld [vmem:[#allocation8 + $0xa78] sm:$0xff] }
 0x2b0   :  { %v4653_v46 = vcombine.high %v728_v38, %v732_v39  ;;  %v720_v49 = vld [vmem:[#allocation8 + $0xa18] sm:$0xff] }
 0x2b1   :  { %4122 = vmatpush1.bf16.msra.mxu0 %v4604_v9  ;;  %v872_v9 = vld [vmem:[#allocation8 + $0xed8] sm:$0xff] }
 0x2b2   :  { %4165 = vmatpush1.bf16.msra.mxu1 %v4732_v59  ;;  %4123 = vmatprep.subr.bf16.mxu0 %v4597_v16  ;;  %v876_v59 = vld [vmem:[#allocation8 + $0xef8] sm:$0xff]  ;;  %v4676_v16 = vcombine.low %v752_v0, %v756_v33 }
 0x2b3   :  { %4166 = vmatprep.subr.bf16.mxu1 %v4725_v11  ;;  %v4804_v11 = vcombine.low %v880_v26, %v884_v1  ;;  %v4797_v2 = vcombine.high %v872_v9, %v876_v59  ;;  %v724_v50 = vld [vmem:[#allocation8 + $0xa38] sm:$0xff] }
 0x2b4   :  { %v4645_v52 = vcombine.high %v720_v49, %v724_v50  ;;  %v4644_v24 = vcombine.low %v720_v49, %v724_v50 }
 0x2b5   :  { %4124 = vmatpush1.bf16.msra.mxu0 %v4596_v17  ;;  %v864_v17 = vld [vmem:[#allocation8 + $0xe98] sm:$0xff] }
 0x2b6   :  { %4167 = vmatpush1.bf16.msra.mxu1 %v4724_v19  ;;  %4125 = vmatprep.subr.bf16.mxu0 %v4589_v23  ;;  %v868_v19 = vld [vmem:[#allocation8 + $0xeb8] sm:$0xff]  ;;  %v4668_v23 = vcombine.low %v744_v7, %v748_v8 }
 0x2b7   :  { %4168 = vmatprep.subr.bf16.mxu1 %v4717_v35  ;;  %v4796_v35 = vcombine.low %v872_v9, %v876_v59  ;;  %v4789_v10 = vcombine.high %v864_v17, %v868_v19 }
 0x2b9   :  { %4126 = vmatpush1.bf16.msra.mxu0 %v4588_v40  ;;  %v856_v40 = vld [vmem:[#allocation8 + $0xe58] sm:$0xff] }
 0x2ba   :  { %4169 = vmatpush1.bf16.msra.mxu1 %v4716_v41  ;;  %4127 = vmatprep.subr.bf16.mxu0 %v4581_v14  ;;  %v860_v41 = vld [vmem:[#allocation8 + $0xe78] sm:$0xff]  ;;  %v4660_v14 = vcombine.low %v736_v15, %v740_v28 }
 0x2bb   :  { %4170 = vmatprep.subr.bf16.mxu1 %v4709_v44  ;;  %v4788_v44 = vcombine.low %v864_v17, %v868_v19  ;;  %v4781_v48 = vcombine.high %v856_v40, %v860_v41 }
 0x2bd   :  { %4128 = vmatpush1.bf16.msra.mxu0 %v4580_v51  ;;  %v848_v51 = vld [vmem:[#allocation8 + $0xe18] sm:$0xff] }
 0x2be   :  { %4171 = vmatpush1.bf16.msra.mxu1 %v4708_v20  ;;  %4129 = vmatprep.subr.bf16.mxu0 %v4701_v21  ;;  %v852_v20 = vld [vmem:[#allocation8 + $0xe38] sm:$0xff]  ;;  %v4652_v21 = vcombine.low %v728_v38, %v732_v39 }
 0x2bf   :  { %4172 = vmatprep.subr.bf16.mxu1 %v4829_v25  ;;  %v4780_v25 = vcombine.low %v856_v40, %v860_v41  ;;  %v4773_v22 = vcombine.high %v848_v51, %v852_v20  ;;  %v4772_v29 = vcombine.low %v848_v51, %v852_v20 }
 0x2c1   :  { %4130 = vmatpush2.bf16.msra.mxu0 %v4700_v54  ;;  %v3545_v54 = vpop.f32.mrf.mxu0 }
 0x2c2   :  { %4173 = vmatpush2.bf16.msra.mxu1 %v4828_v55  ;;  %4131 = vmatprep.subr.bf16.mxu0 %v4693_v56  ;;  %v3588_v55 = vpop.f32.mrf.mxu1 }
 0x2c3   :  { %4174 = vmatprep.subr.bf16.mxu1 %v4821_v57  ;;  %v3547_v56 = vpop.f32.mrf.mxu0 }
 0x2c4   :  { %v3590_v57 = vpop.f32.mrf.mxu1 }
 0x2c5   :  { %4132 = vmatpush2.bf16.msra.mxu0 %v4692_v61  ;;  %v3549_v13 = vpop.f32.mrf.mxu0 }
 0x2c6   :  { %4175 = vmatpush2.bf16.msra.mxu1 %v4820_v53  ;;  %4133 = vmatprep.subr.bf16.mxu0 %v4685_v62  ;;  %v3592_v58 = vpop.f32.mrf.mxu1 }
 0x2c7   :  { %4176 = vmatprep.subr.bf16.mxu1 %v4813_v63  ;;  %v3551_v60 = vpop.f32.mrf.mxu0 }
 0x2c8   :  { %v3594_v18 = vpop.f32.mrf.mxu1 }
 0x2c9   :  { %4134 = vmatpush2.bf16.msra.mxu0 %v4684_v3  ;;  %v3631_v61 = vpop.f32.mrf.mxu0 }
 0x2ca   :  { %4177 = vmatpush2.bf16.msra.mxu1 %v4812_v4  ;;  %4135 = vmatprep.subr.bf16.mxu0 %v4677_v5  ;;  %v5168_v53 = vpop.f32.mrf.mxu1 }
 0x2cb   :  { %4178 = vmatprep.subr.bf16.mxu1 %v4805_v6  ;;  %v3633_v62 = vpop.f32.mrf.mxu0 }
 0x2cc   :  { %v3676_v63 = vpop.f32.mrf.mxu1 }
 0x2cd   :  { %4136 = vmatpush2.bf16.msra.mxu0 %v4676_v16  ;;  %v5170_v0 = vpop.f32.mrf.mxu0 }
 0x2ce   :  { %4179 = vmatpush2.bf16.msra.mxu1 %v4804_v11  ;;  %4137 = vmatprep.subr.bf16.mxu0 %v4669_v12  ;;  %v5172_v33 = vpop.f32.mrf.mxu1 }
 0x2cf   :  { %4180 = vmatprep.subr.bf16.mxu1 %v4797_v2 }
 0x2d0   :  { %v5174_v26 = vpop.f32.mrf.mxu1 }
 0x2d1   :  { %4138 = vmatpush2.bf16.msra.mxu0 %v4668_v23 }
 0x2d2   :  { %4181 = vmatpush2.bf16.msra.mxu1 %v4796_v35  ;;  %4139 = vmatprep.subr.bf16.mxu0 %v4661_v37  ;;  %v3760_v1 = vpop.f32.mrf.mxu1  ;;  %v5188_v37 = vld [vmem:[#allocation10] sm:$0xff] }
 0x2d3   :  { %4182 = vmatprep.subr.bf16.mxu1 %v4789_v10  ;;  %v918_v38 = vrot.slane %v5188_v37, %v5061_v30  ;;  %v914_v40 = vrot.slane %v5188_v37, %v5064_v31  ;;  %v922_v41 = vrot.slane %v5188_v37, %v5072_v34  ;;  %v926_v51 = vrot.slane %v5188_v37, %v5067_v32 }
 0x2d4   :  { %v3762_v4 = vpop.f32.mrf.mxu1 }
 0x2d5   :  { %4140 = vmatpush2.bf16.msra.mxu0 %v4660_v14 }
 0x2d6   :  { %4183 = vmatpush2.bf16.msra.mxu1 %v4788_v44  ;;  %4141 = vmatprep.subr.bf16.mxu0 %v4653_v46  ;;  %v3764_v6 = vpop.f32.mrf.mxu1  ;;  %v3548_v44 = vadd.f32 %v3547_v56, %v918_v38 }
 0x2d7   :  { %4184 = vmatprep.subr.bf16.mxu1 %v4781_v48  ;;  %v3546_v48 = vadd.f32 %v3545_v54, %v914_v40 }
 0x2d8   :  { %v5176_v8 = vpop.f32.mrf.mxu1 }
 0x2d9   :  { %4142 = vmatpush2.bf16.msra.mxu0 %v4652_v21  ;;  %v3591_v21 = vadd.f32 %v3590_v57, %v3548_v44  ;;  %v934_v57 = vrot.slane %v5188_v37, %v5083_v43 }
 0x2da   :  { %4185 = vmatpush2.bf16.msra.mxu1 %v4780_v25  ;;  %4143 = vmatprep.subr.bf16.mxu0 %v4645_v52  ;;  %v3846_v59 = vpop.f32.mrf.mxu1  ;;  %v3552_v25 = vadd.f32 %v3551_v60, %v918_v38  ;;  %v3589_v52 = vadd.f32 %v3588_v55, %v3546_v48 }
 0x2db   :  { %4186 = vmatprep.subr.bf16.mxu1 %v4773_v22  ;;  %v3550_v22 = vadd.f32 %v3549_v13, %v914_v40  ;;  %v3634_v45 = vadd.f32 %v3633_v62, %v3591_v21 }
 0x2dc   :  { %v5178_v11 = vpop.f32.mrf.mxu1  ;;  %v3632_v54 = vadd.f32 %v3631_v61, %v3589_v52  ;;  %v5271_v52 = vld [vmem:[#allocation17_spill] sm:$0xff] }
 0x2dd   :  { %4144 = vmatpush2.bf16.msra.mxu0 %v4644_v24  ;;  %v930_v24 = vrot.slane %v5188_v37, %v5125_v42  ;;  %v3677_v13 = vadd.f32 %v3676_v63, %v3634_v45 }
 0x2de   :  { %4187 = vmatpush2.bf16.msra.mxu1 %v4772_v29  ;;  %v5180_v2 = vpop.f32.mrf.mxu1  ;;  %v3675_v62 = vadd.f32 %v5168_v53, %v3632_v54 }
 0x2df   :  { %v4200_v63 = vmax.f32 %v3677_v13, 0.0 }
 0x2e0   :  { %4146 = vmatmul.mubr.bf16.vlgmr.msra.gmra.mxu0 %v5138_v27  ;;  %v3637_v27 = vpop.f32.mrf.mxu0  ;;  %v5184_v28 = vpop.f32.mrf.mxu1 }
 0x2e1   :  { %4189 = vmatmul.mubr.bf16.vlgmr.msra.gmra.mxu1 %v5140_v36  ;;  %5266 = vst [vmem:[#allocation21_spill] sm:$0xff] %v5184_v28 }
 0x2e2   :  { %v3717_v36 = vpop.f32.mrf.mxu0  ;;  %v3932_v19 = vpop.f32.mrf.mxu1 }
 0x2e3   :  { %v3718_v50 = vadd.f32 %v3717_v36, %v922_v41  ;;  %v3595_v36 = vadd.f32 %v3594_v18, %v3552_v25 }
 0x2e4   :  { %v3719_v3 = vpop.f32.mrf.mxu0  ;;  %v5186_v35 = vpop.f32.mrf.mxu1 }
 0x2e5   :  { %5267 = vst [vmem:[#allocation22_spill] sm:$0xff] %v5186_v35  ;;  %v3761_v28 = vadd.f32 %v3760_v1, %v3718_v50  ;;  %v3720_v56 = vadd.f32 %v3719_v3, %v926_v51  ;;  %v3638_v60 = vadd.f32 %v3637_v27, %v3595_v36  ;;  %v5207_v1 = vld [vmem:[#allocation11] sm:$0xff] }
 0x2e6   :  { %v3721_v5 = vpop.f32.mrf.mxu0  ;;  %v3936_v39 = vpop.f32.mrf.mxu1  ;;  %v4220_v45 = vrot.slane %v5207_v1, %v5064_v31 }
 0x2e7   :  { %v3722_v47 = vadd.f32 %v3721_v5, %v922_v41  ;;  %v3763_v38 = vadd.f32 %v3762_v4, %v3720_v56  ;;  %v3681_v53 = vadd.f32 %v5174_v26, %v3638_v60  ;;  %v4199_v4 = vmax.f32 %v3675_v62, 0.0 }
 0x2e8   :  { %v3723_v7 = vpop.f32.mrf.mxu0  ;;  %v5196_v46 = vpop.f32.mrf.mxu1 }
 0x2e9   :  { %5268 = vst [vmem:[#allocation23_spill] sm:$0xff] %v5196_v46  ;;  %v3765_v40 = vadd.f32 %v3764_v6, %v3722_v47  ;;  %v3724_v3 = vadd.f32 %v3723_v7, %v926_v51  ;;  %v4224_v47 = vrot.slane %v5207_v1, %v5061_v30  ;;  %v4228_v6 = vrot.slane %v5207_v1, %v5072_v34 }
 0x2ea   :  { %v3803_v9 = vpop.f32.mrf.mxu0  ;;  %v4208_v48 = vmax.f32 %v3681_v53, 0.0  ;;  %v4257_v50 = vmul.f32 %v4220_v45, %v4199_v4 }
 0x2eb   :  { %v3804_v35 = vadd.f32 %v3803_v9, %v3761_v28 }
 0x2ec   :  { %v3805_v16 = vpop.f32.mrf.mxu0  ;;  %v5270_v26 = vld [vmem:[#allocation22_spill] sm:$0xff] }
 0x2ed   :  { %v3847_v18 = vadd.f32 %v3846_v59, %v3804_v35  ;;  %v3806_v5 = vadd.f32 %v3805_v16, %v3763_v38 }
 0x2ee   :  { %v3807_v12 = vpop.f32.mrf.mxu0 }
 0x2ef   :  { %v4201_v16 = vmax.f32 %v3847_v18, 0.0  ;;  %v3849_v31 = vadd.f32 %v5178_v11, %v3806_v5  ;;  %v4232_v11 = vrot.slane %v5207_v1, %v5271_v52 }
 0x2f0   :  { %v5182_v15 = vpop.f32.mrf.mxu0  ;;  %v5274_v36 = vld [vmem:[#allocation23_spill] sm:$0xff] }
 0x2f1   :  { %5265 = vst [vmem:[#allocation20_spill] sm:$0xff] %v5182_v15  ;;  %v3593_v15 = vadd.f32 %v3592_v58, %v3550_v22  ;;  %v3808_v58 = vadd.f32 %v3807_v12, %v3765_v40  ;;  %v4259_v25 = vmul.f32 %v4228_v6, %v4201_v16  ;;  %v4202_v56 = vmax.f32 %v3849_v31, 0.0 }
 0x2f2   :  { %v3889_v17 = vpop.f32.mrf.mxu0 }
 0x2f3   :  { %v3890_v32 = vadd.f32 %v3889_v17, %v930_v24  ;;  %v3636_v61 = vadd.f32 %v5170_v0, %v3593_v15  ;;  %v3767_v0 = vadd.f32 %v5176_v8, %v3724_v3  ;;  %v3851_v12 = vadd.f32 %v5180_v2, %v3808_v58  ;;  %v5272_v2 = vld [vmem:[#allocation19_spill] sm:$0xff] }
 0x2f4   :  { %v3891_v23 = vpop.f32.mrf.mxu0  ;;  %v4258_v8 = vmul.f32 %v4224_v47, %v4200_v63  ;;  %v938_v22 = vrot.slane %v5188_v37, %v5272_v2 }
 0x2f5   :  { %v3933_v9 = vadd.f32 %v3932_v19, %v3890_v32  ;;  %v3892_v28 = vadd.f32 %v3891_v23, %v934_v57  ;;  %v3679_v59 = vadd.f32 %v5172_v33, %v3636_v61  ;;  %v4209_v54 = vmax.f32 %v3851_v12, 0.0 }
 0x2f6   :  { %v3893_v10 = vpop.f32.mrf.mxu0  ;;  %v4273_v13 = vadd.f32 %v4258_v8, %v4257_v50 }
 0x2f7   :  { %v3894_v17 = vadd.f32 %v3893_v10, %v930_v24  ;;  %v3935_v23 = vadd.f32 %v5270_v26, %v3892_v28  ;;  %v4207_v33 = vmax.f32 %v3679_v59, 0.0  ;;  %v4260_v28 = vmul.f32 %v4232_v11, %v4202_v56 }
 0x2f8   :  { %v3895_v14 = vpop.f32.mrf.mxu0  ;;  %v5269_v30 = vld [vmem:[#allocation20_spill] sm:$0xff] }
 0x2f9   :  { %v3810_v19 = vadd.f32 %v5269_v30, %v3767_v0  ;;  %v3937_v35 = vadd.f32 %v3936_v39, %v3894_v17  ;;  %v3896_v10 = vadd.f32 %v3895_v14, %v934_v57  ;;  %v5273_v39 = vld [vmem:[#allocation21_spill] sm:$0xff]  ;;  %v4265_v18 = vmul.f32 %v4220_v45, %v4207_v33 }
 0x2fa   :  { %v4267_v17 = vmul.f32 %v4228_v6, %v4209_v54 }
 0x2fb   :  { %v3853_v14 = vadd.f32 %v5273_v39, %v3810_v19  ;;  %v3939_v57 = vadd.f32 %v5274_v36, %v3896_v10 }
 0x2fd   :  { %v4210_v63 = vmax.f32 %v3853_v14, 0.0 }
 0x2ff   :  { %v4268_v16 = vmul.f32 %v4232_v11, %v4210_v63 }
 0x320   :  { %v3975_v49 = vpop.f32.mrf.mxu0 }
 0x321   :  { %v4018_v20 = vpop.f32.mrf.mxu1  ;;  %v3976_v32 = vadd.f32 %v3975_v49, %v3933_v9  ;;  %v4274_v9 = vadd.f32 %v4273_v13, %v4259_v25 }
 0x322   :  { %v3977_v29 = vpop.f32.mrf.mxu0 }
 0x323   :  { %v5202_v46 = vpop.f32.mrf.mxu1  ;;  %v4019_v34 = vadd.f32 %v4018_v20, %v3976_v32  ;;  %v3978_v49 = vadd.f32 %v3977_v29, %v3935_v23  ;;  %v4266_v20 = vmul.f32 %v4224_v47, %v4208_v48  ;;  %v4236_v29 = vrot.slane %v5207_v1, %v5125_v42 }
 0x324   :  { %v3979_v55 = vpop.f32.mrf.mxu0  ;;  %v4240_v42 = vrot.slane %v5207_v1, %v5083_v43  ;;  %v4275_v45 = vadd.f32 %v4274_v9, %v4260_v28 }
 0x325   :  { %v4022_v44 = vpop.f32.mrf.mxu1  ;;  %v3980_v51 = vadd.f32 %v3979_v55, %v3937_v35  ;;  %v5275_v55 = vld [vmem:[#allocation18_spill] sm:$0xff]  ;;  %v4203_v38 = vmax.f32 %v4019_v34, 0.0  ;;  %v4021_v40 = vadd.f32 %v5202_v46, %v3978_v49  ;;  %v4282_v47 = vadd.f32 %v4266_v20, %v4265_v18 }
 0x326   :  { %v3981_v41 = vpop.f32.mrf.mxu0  ;;  %v942_v60 = vrot.slane %v5188_v37, %v5275_v55  ;;  %v4292_v18 = vstv %s5255_s6 }
 0x327   :  { %v4024_v27 = vpop.f32.mrf.mxu1  ;;  %v4023_v62 = vadd.f32 %v4022_v44, %v3980_v51  ;;  %v3982_v3 = vadd.f32 %v3981_v41, %v3939_v57  ;;  %v4261_v4 = vmul.f32 %v4236_v29, %v4203_v38  ;;  %v4204_v37 = vmax.f32 %v4021_v40, 0.0 }
 0x328   :  { %v4248_v51 = vrot.slane %v5207_v1, %v5275_v55 }
 0x329   :  { %v4211_v0 = vmax.f32 %v4023_v62, 0.0  ;;  %v4025_v32 = vadd.f32 %v4024_v27, %v3982_v3  ;;  %v4276_v26 = vadd.f32 %v4275_v45, %v4261_v4  ;;  %v4262_v23 = vmul.f32 %v4240_v42, %v4204_v37 }
 0x32a   :  { %v4244_v27 = vrot.slane %v5207_v1, %v5272_v2 }
 0x32b   :  { %v4269_v43 = vmul.f32 %v4236_v29, %v4211_v0  ;;  %v4212_v35 = vmax.f32 %v4025_v32, 0.0  ;;  %v4277_v54 = vadd.f32 %v4276_v26, %v4262_v23 }
 0x360   :  { %v4061_v7 = vpop.f32.mrf.mxu0 }
 0x361   :  { %v4104_v15 = vpop.f32.mrf.mxu1  ;;  %v4062_v5 = vadd.f32 %v4061_v7, %v938_v22  ;;  %v4283_v7 = vadd.f32 %v4282_v47, %v4267_v17 }
 0x362   :  { %v4063_v21 = vpop.f32.mrf.mxu0 }
 0x363   :  { %v4106_v24 = vpop.f32.mrf.mxu1  ;;  %v4064_v53 = vadd.f32 %v4063_v21, %v942_v60  ;;  %v4105_v44 = vadd.f32 %v4104_v15, %v4062_v5  ;;  %v4284_v34 = vadd.f32 %v4283_v7, %v4268_v16 }
 0x364   :  { %v4065_v61 = vpop.f32.mrf.mxu0 }
 0x365   :  { %v4108_v58 = vpop.f32.mrf.mxu1  ;;  %v4066_v41 = vadd.f32 %v4065_v61, %v938_v22  ;;  %v4107_v12 = vadd.f32 %v4106_v24, %v4064_v53  ;;  %v4285_v22 = vadd.f32 %v4284_v34, %v4269_v43  ;;  %v4270_v24 = vmul.f32 %v4240_v42, %v4212_v35 }
 0x366   :  { %v4067_v46 = vpop.f32.mrf.mxu0 }
 0x367   :  { %v4110_v59 = vpop.f32.mrf.mxu1  ;;  %v4068_v6 = vadd.f32 %v4067_v46, %v942_v60  ;;  %v4109_v8 = vadd.f32 %v4108_v58, %v4066_v41  ;;  %v4286_v38 = vadd.f32 %v4285_v22, %v4270_v24 }
 0x369   :  { %v4111_v21 = vadd.f32 %v4110_v59, %v4068_v6 }
 0x3a0   :  { %v4147_v31 = vpop.f32.mrf.mxu0 }
 0x3a1   :  { %v4148_v30 = vadd.f32 %v4147_v31, %v4105_v44  ;;  %v4190_v19 = vpop.f32.mrf.mxu1 }
 0x3a2   :  { %v4149_v10 = vpop.f32.mrf.mxu0 }
 0x3a3   :  { %v4191_v48 = vadd.f32 %v4190_v19, %v4148_v30  ;;  %v4150_v15 = vadd.f32 %v4149_v10, %v4107_v12  ;;  %v4192_v50 = vpop.f32.mrf.mxu1 }
 0x3a4   :  { %v4151_v49 = vpop.f32.mrf.mxu0 }
 0x3a5   :  { %v4205_v33 = vmax.f32 %v4191_v48, 0.0  ;;  %v4193_v25 = vadd.f32 %v4192_v50, %v4150_v15  ;;  %v4152_v52 = vadd.f32 %v4151_v49, %v4109_v8  ;;  %v4194_v11 = vpop.f32.mrf.mxu1 }
 0x3a6   :  { %v4153_v56 = vpop.f32.mrf.mxu0 }
 0x3a7   :  { %v4263_v39 = vmul.f32 %v4244_v27, %v4205_v33  ;;  %v4206_v14 = vmax.f32 %v4193_v25, 0.0  ;;  %v4195_v36 = vadd.f32 %v4194_v11, %v4152_v52  ;;  %v4154_v2 = vadd.f32 %v4153_v56, %v4111_v21  ;;  %v4196_v57 = vpop.f32.mrf.mxu1 }
 0x3a9   :  { %v4213_v13 = vmax.f32 %v4195_v36, 0.0  ;;  %v4197_v20 = vadd.f32 %v4196_v57, %v4154_v2  ;;  %v4264_v29 = vmul.f32 %v4248_v51, %v4206_v14  ;;  %v4278_v60 = vadd.f32 %v4277_v54, %v4263_v39 }
 0x3ab   :  { %v4271_v1 = vmul.f32 %v4244_v27, %v4213_v13  ;;  %v4214_v55 = vmax.f32 %v4197_v20, 0.0  ;;  %v4279_v40 = vadd.f32 %v4278_v60, %v4264_v29 }
 0x3ad   :  { %v4272_v62 = vmul.f32 %v4248_v51, %v4214_v55  ;;  %4280 = vadd.xlane.f32.xlu0 %v4279_v40  ;;  %v4287_v3 = vadd.f32 %v4286_v38, %v4271_v1 }
 0x3af   :  { %v4288_v61 = vadd.f32 %v4287_v3, %v4272_v62 }
 0x3b1   :  { %4289 = vadd.xlane.f32.xlu0 %v4288_v61 }
 0x436   :  { %v4281_v5 = vpop.xlane.xlu0 %4280 }
 0x437   :  { %v4293_v58 = vadd.f32 %v4292_v18, %v4281_v5 }
 0x439   :  { %4296 = vst.msk [vmem:[%s5256_s7] sm:$0xff] %vm4295_vm1, %v4293_v58 }
 0x43a   :  { %v4290_v9 = vpop.xlane.xlu0 %4289 }
 0x43b   :  { %v4294_v28 = vadd.f32 %v4292_v18, %v4290_v9 }
 0x43d   :  { %4297 = vst.msk [vmem:[%s5256_s7 + $0x8] sm:$0xff] %vm4295_vm1, %v4294_v28 }
 0x43e   :  { %4302 = vsyncpa [#allocation4], 1 }
 0x43f   :  { %4303 = vsyncpa [#allocation6], 1 }
 0x440   :  { %4304 = vsyncpa [#allocation9], 1 }
 0x441   :  { %4305 = vsyncpa [#allocation12], 1 }

</bundles_post_ra>
